<compile_context>
chip_gen: v7x
topology: tpu7x:2x2x1
jax: 0.10.0
libtpu: 0.0.40
codegen_flags: <defaults>
</compile_context>

<pallas_src>
import jax
import jax.numpy as jnp
from jax.experimental import pallas as pl
from jax.experimental.pallas import tpu as pltpu

LANE = 128


def _round_up(n, m):
    return (n + m - 1) // m * m


def _nbeats_kernel(
    x_ref,
    w1_ref, b1_ref,
    w2_ref, b2_ref,
    w3_ref, b3_ref,
    w4_ref, b4_ref,
    wbf_ref,                 # fused [fc_b | fc_f] weight, (W_P, 2*W_P), no bias
    wgb_ref, bgb_ref,
    wgf_ref, bgf_ref,
    back_ref, fore_ref,
):
    def dense(h, w_ref, b_ref=None):
        # Cast activations to the (possibly bf16) weight dtype; accumulate in f32.
        y = jnp.dot(h.astype(w_ref.dtype), w_ref[...],
                    preferred_element_type=jnp.float32)
        if b_ref is not None:
            y = y + b_ref[...].astype(jnp.float32)
        return y

    x = x_ref[...].astype(jnp.float32)

    # fc1..fc4 + ReLU (MXU matmuls, VPU elementwise).
    h = jnp.maximum(dense(x, w1_ref, b1_ref), 0.0)
    h = jnp.maximum(dense(h, w2_ref, b2_ref), 0.0)
    h = jnp.maximum(dense(h, w3_ref, b3_ref), 0.0)
    h = jnp.maximum(dense(h, w4_ref, b4_ref), 0.0)

    # Fused theta matmul: one MXU pass, then split along lanes (128-aligned).
    theta = dense(h, wbf_ref)                      # (tile, 2*W_P)
    wp = wbf_ref.shape[1] // 2
    theta_b = theta[:, :wp]
    theta_f = theta[:, wp:]

    # Basis projections (lane-dense outputs -> unmasked stores).
    back_ref[...] = dense(theta_b, wgb_ref, bgb_ref).astype(back_ref.dtype)
    fore_ref[...] = dense(theta_f, wgf_ref, bgf_ref).astype(fore_ref.dtype)


def nbeats_block_forward(x, params, *, row_tile=128, param_dtype=jnp.float32):
    """x: (batch, input_dim) float32.  params: dict of (in,out) weights / (1,out) biases."""
    batch, input_dim = x.shape
    width = params["w1"].shape[1]
    output_dim = params["wgf"].shape[1]

    # Lane-dense padded dims (multiples of 128) and row-tiled batch.
    in_p = _round_up(input_dim, LANE)
    w_p = _round_up(width, LANE)
    out_p = _round_up(output_dim, LANE)
    row_tile = max(8, row_tile)
    b_p = _round_up(batch, row_tile)
    grid = (b_p // row_tile,)

    # Zero-pad input; padded rows/features contribute nothing to valid outputs.
    xp = jnp.zeros((b_p, in_p), jnp.float32).at[:batch, :input_dim].set(x)

    def wpad(w, rows, cols):
        return (jnp.zeros((rows, cols), param_dtype)
                .at[: w.shape[0], : w.shape[1]].set(w.astype(param_dtype)))

    def bpad(b, cols):
        return (jnp.zeros((1, cols), param_dtype)
                .at[:, : b.shape[1]].set(b.astype(param_dtype)))

    w1 = wpad(params["w1"], in_p, w_p); b1 = bpad(params["b1"], w_p)
    w2 = wpad(params["w2"], w_p, w_p);  b2 = bpad(params["b2"], w_p)
    w3 = wpad(params["w3"], w_p, w_p);  b3 = bpad(params["b3"], w_p)
    w4 = wpad(params["w4"], w_p, w_p);  b4 = bpad(params["b4"], w_p)
    # Fused theta weight: [fc_b | fc_f] -> (W_P, 2*W_P).
    wbf = jnp.concatenate(
        [wpad(params["wb"], w_p, w_p), wpad(params["wf"], w_p, w_p)], axis=1)
    wgb = wpad(params["wgb"], w_p, in_p);  bgb = bpad(params["bgb"], in_p)
    wgf = wpad(params["wgf"], w_p, out_p); bgf = bpad(params["bgf"], out_p)

    def row_spec(cols):
        # Batch-tiled arrays stream through the pipeline.
        return pl.BlockSpec((row_tile, cols), lambda i: (i, 0))

    def resident(shape):
        # Constant block index -> DMA'd once, stays resident in VMEM.
        return pl.BlockSpec(shape, lambda i: (0, 0))

    in_specs = [
        row_spec(in_p),
        resident((in_p, w_p)), resident((1, w_p)),
        resident((w_p, w_p)),  resident((1, w_p)),
        resident((w_p, w_p)),  resident((1, w_p)),
        resident((w_p, w_p)),  resident((1, w_p)),
        resident((w_p, 2 * w_p)),
        resident((w_p, in_p)), resident((1, in_p)),
        resident((w_p, out_p)), resident((1, out_p)),
    ]
    out_specs = (row_spec(in_p), row_spec(out_p))

    backcast_p, forecast_p = pl.pallas_call(
        _nbeats_kernel,
        grid=grid,
        in_specs=in_specs,
        out_specs=out_specs,
        out_shape=(
            jax.ShapeDtypeStruct((b_p, in_p), jnp.float32),
            jax.ShapeDtypeStruct((b_p, out_p), jnp.float32),
        ),
        compiler_params=pltpu.CompilerParams(
            dimension_semantics=("parallel",),
        ),
    )(xp, w1, b1, w2, b2, w3, b3, w4, b4, wbf, wgb, bgb, wgf, bgf)

    # Slice back to logical shapes.
    return backcast_p[:batch, :input_dim], forecast_p[:batch, :output_dim]


def init_params(key, input_dim, output_dim, width):
    """Deterministic synthetic init matching nn.Linear's fan-in uniform bounds."""
    ks = jax.random.split(key, 16)

    def w(k, fan_in, fan_out):
        bound = 1.0 / jnp.sqrt(fan_in)
        return jax.random.uniform(k, (fan_in, fan_out), jnp.float32, -bound, bound)

    def b(k, fan_in, fan_out):
        bound = 1.0 / jnp.sqrt(fan_in)
        return jax.random.uniform(k, (1, fan_out), jnp.float32, -bound, bound)

    return {
        "w1": w(ks[0], input_dim, width), "b1": b(ks[1], input_dim, width),
        "w2": w(ks[2], width, width),     "b2": b(ks[3], width, width),
        "w3": w(ks[4], width, width),     "b3": b(ks[5], width, width),
        "w4": w(ks[6], width, width),     "b4": b(ks[7], width, width),
        "wb": w(ks[8], width, width),     # fc_b, bias=False
        "wf": w(ks[9], width, width),     # fc_f, bias=False
        "wgb": w(ks[10], width, input_dim),  "bgb": b(ks[11], width, input_dim),
        "wgf": w(ks[12], width, output_dim), "bgf": b(ks[13], width, output_dim),
    }


def reference_forward(x, p):
    """Plain-JAX reference with identical semantics (correctness check)."""
    h = jax.nn.relu(x @ p["w1"] + p["b1"])
    h = jax.nn.relu(h @ p["w2"] + p["b2"])
    h = jax.nn.relu(h @ p["w3"] + p["b3"])
    h = jax.nn.relu(h @ p["w4"] + p["b4"])
    theta_b = h @ p["wb"]
    theta_f = h @ p["wf"]
    return theta_b @ p["wgb"] + p["bgb"], theta_f @ p["wgf"] + p["bgf"]


if __name__ == "__main__":
    # Small logical shapes (matching the module), with a batch large enough to
    # exercise the row-tiled grid (2 tiles of 128 rows after padding).
    batch, input_dim, output_dim, width = 200, 16, 8, 32

    key = jax.random.PRNGKey(0)
    kx, kp = jax.random.split(key)
    x = jax.random.normal(kx, (batch, input_dim), jnp.float32)
    params = init_params(kp, input_dim, output_dim, width)

    ref_b, ref_f = reference_forward(x, params)

    # f32 weights: exact-path check.
    backcast, forecast = nbeats_block_forward(x, params, row_tile=128,
                                              param_dtype=jnp.float32)
    jax.block_until_ready((backcast, forecast))
    assert backcast.shape == (batch, input_dim)
    assert forecast.shape == (batch, output_dim)
    assert jnp.allclose(backcast, ref_b, atol=1e-4, rtol=1e-4)
    assert jnp.allclose(forecast, ref_f, atol=1e-4, rtol=1e-4)

    # bf16 weights (v6e/v7x MXU fast path), f32 accumulation: looser tolerance.
    backcast_bf, forecast_bf = nbeats_block_forward(x, params, row_tile=128,
                                                    param_dtype=jnp.bfloat16)
    jax.block_until_ready((backcast_bf, forecast_bf))
    assert jnp.allclose(backcast_bf, ref_b, atol=5e-2, rtol=5e-2)
    assert jnp.allclose(forecast_bf, ref_f, atol=5e-2, rtol=5e-2)

    print("KERNEL_OK")
</pallas_src>

<mosaic_0001>
module attributes {stable_mosaic.version = 11 : i64} {
  func.func @_nbeats_kernel(%arg0: i32, %arg1: memref<128x128xf32, #tpu.memory_space<vmem>>, %arg2: memref<128x128xf32, #tpu.memory_space<vmem>>, %arg3: memref<1x128xf32, #tpu.memory_space<vmem>>, %arg4: memref<128x128xf32, #tpu.memory_space<vmem>>, %arg5: memref<1x128xf32, #tpu.memory_space<vmem>>, %arg6: memref<128x128xf32, #tpu.memory_space<vmem>>, %arg7: memref<1x128xf32, #tpu.memory_space<vmem>>, %arg8: memref<128x128xf32, #tpu.memory_space<vmem>>, %arg9: memref<1x128xf32, #tpu.memory_space<vmem>>, %arg10: memref<128x256xf32, #tpu.memory_space<vmem>>, %arg11: memref<128x128xf32, #tpu.memory_space<vmem>>, %arg12: memref<1x128xf32, #tpu.memory_space<vmem>>, %arg13: memref<128x128xf32, #tpu.memory_space<vmem>>, %arg14: memref<1x128xf32, #tpu.memory_space<vmem>>, %arg15: memref<128x128xf32, #tpu.memory_space<vmem>>, %arg16: memref<128x128xf32, #tpu.memory_space<vmem>>) attributes {dimension_semantics = [#tpu.dimension_semantics<parallel>], iteration_bounds = array<i64: 2>, scalar_prefetch = 0 : i64, scratch_operands = 0 : i64, tpu.core_type = #tpu.core_type<tc>, window_params = [{transform_indices = @transform_0, window_bounds = array<i64: 128, 128>}, {pipeline_mode = #tpu.pipeline_mode<synchronous>, transform_indices = @transform_1, window_bounds = array<i64: 128, 128>}, {pipeline_mode = #tpu.pipeline_mode<synchronous>, transform_indices = @transform_2, window_bounds = array<i64: 1, 128>}, {pipeline_mode = #tpu.pipeline_mode<synchronous>, transform_indices = @transform_3, window_bounds = array<i64: 128, 128>}, {pipeline_mode = #tpu.pipeline_mode<synchronous>, transform_indices = @transform_4, window_bounds = array<i64: 1, 128>}, {pipeline_mode = #tpu.pipeline_mode<synchronous>, transform_indices = @transform_5, window_bounds = array<i64: 128, 128>}, {pipeline_mode = #tpu.pipeline_mode<synchronous>, transform_indices = @transform_6, window_bounds = array<i64: 1, 128>}, {pipeline_mode = #tpu.pipeline_mode<synchronous>, transform_indices = @transform_7, window_bounds = array<i64: 128, 128>}, {pipeline_mode = #tpu.pipeline_mode<synchronous>, transform_indices = @transform_8, window_bounds = array<i64: 1, 128>}, {pipeline_mode = #tpu.pipeline_mode<synchronous>, transform_indices = @transform_9, window_bounds = array<i64: 128, 256>}, {pipeline_mode = #tpu.pipeline_mode<synchronous>, transform_indices = @transform_10, window_bounds = array<i64: 128, 128>}, {pipeline_mode = #tpu.pipeline_mode<synchronous>, transform_indices = @transform_11, window_bounds = array<i64: 1, 128>}, {pipeline_mode = #tpu.pipeline_mode<synchronous>, transform_indices = @transform_12, window_bounds = array<i64: 128, 128>}, {pipeline_mode = #tpu.pipeline_mode<synchronous>, transform_indices = @transform_13, window_bounds = array<i64: 1, 128>}, {transform_indices = @transform_14, window_bounds = array<i64: 128, 128>}, {transform_indices = @transform_15, window_bounds = array<i64: 128, 128>}]} {
    %c0 = arith.constant 0 : index
    %c0_0 = arith.constant 0 : index
    %0 = vector.load %arg1[%c0, %c0_0] : memref<128x128xf32, #tpu.memory_space<vmem>>, vector<128x128xf32>
    %c0_1 = arith.constant 0 : index
    %c0_2 = arith.constant 0 : index
    %1 = vector.load %arg2[%c0_1, %c0_2] : memref<128x128xf32, #tpu.memory_space<vmem>>, vector<128x128xf32>
    %cst = arith.constant dense<0.000000e+00> : vector<128x128xf32>
    %2 = tpu.matmul %0, %1, %cst {dimension_numbers = #tpu.dot_dimension_numbers<[1], [0], [0], [1], [0, 0, 1, 1], [], []>} : vector<128x128xf32>, vector<128x128xf32>, vector<128x128xf32> -> vector<128x128xf32>
    %c0_3 = arith.constant 0 : index
    %c0_4 = arith.constant 0 : index
    %3 = vector.load %arg3[%c0_3, %c0_4] : memref<1x128xf32, #tpu.memory_space<vmem>>, vector<1x128xf32>
    %4 = vector.broadcast %3 : vector<1x128xf32> to vector<128x128xf32>
    %5 = arith.addf %2, %4 : vector<128x128xf32>
    %cst_5 = arith.constant 0.000000e+00 : f32
    %6 = vector.broadcast %cst_5 : f32 to vector<128x128xf32>
    %7 = arith.maximumf %5, %6 : vector<128x128xf32>
    %c0_6 = arith.constant 0 : index
    %c0_7 = arith.constant 0 : index
    %8 = vector.load %arg4[%c0_6, %c0_7] : memref<128x128xf32, #tpu.memory_space<vmem>>, vector<128x128xf32>
    %cst_8 = arith.constant dense<0.000000e+00> : vector<128x128xf32>
    %9 = tpu.matmul %7, %8, %cst_8 {dimension_numbers = #tpu.dot_dimension_numbers<[1], [0], [0], [1], [0, 0, 1, 1], [], []>} : vector<128x128xf32>, vector<128x128xf32>, vector<128x128xf32> -> vector<128x128xf32>
    %c0_9 = arith.constant 0 : index
    %c0_10 = arith.constant 0 : index
    %10 = vector.load %arg5[%c0_9, %c0_10] : memref<1x128xf32, #tpu.memory_space<vmem>>, vector<1x128xf32>
    %11 = vector.broadcast %10 : vector<1x128xf32> to vector<128x128xf32>
    %12 = arith.addf %9, %11 : vector<128x128xf32>
    %cst_11 = arith.constant 0.000000e+00 : f32
    %13 = vector.broadcast %cst_11 : f32 to vector<128x128xf32>
    %14 = arith.maximumf %12, %13 : vector<128x128xf32>
    %c0_12 = arith.constant 0 : index
    %c0_13 = arith.constant 0 : index
    %15 = vector.load %arg6[%c0_12, %c0_13] : memref<128x128xf32, #tpu.memory_space<vmem>>, vector<128x128xf32>
    %cst_14 = arith.constant dense<0.000000e+00> : vector<128x128xf32>
    %16 = tpu.matmul %14, %15, %cst_14 {dimension_numbers = #tpu.dot_dimension_numbers<[1], [0], [0], [1], [0, 0, 1, 1], [], []>} : vector<128x128xf32>, vector<128x128xf32>, vector<128x128xf32> -> vector<128x128xf32>
    %c0_15 = arith.constant 0 : index
    %c0_16 = arith.constant 0 : index
    %17 = vector.load %arg7[%c0_15, %c0_16] : memref<1x128xf32, #tpu.memory_space<vmem>>, vector<1x128xf32>
    %18 = vector.broadcast %17 : vector<1x128xf32> to vector<128x128xf32>
    %19 = arith.addf %16, %18 : vector<128x128xf32>
    %cst_17 = arith.constant 0.000000e+00 : f32
    %20 = vector.broadcast %cst_17 : f32 to vector<128x128xf32>
    %21 = arith.maximumf %19, %20 : vector<128x128xf32>
    %c0_18 = arith.constant 0 : index
    %c0_19 = arith.constant 0 : index
    %22 = vector.load %arg8[%c0_18, %c0_19] : memref<128x128xf32, #tpu.memory_space<vmem>>, vector<128x128xf32>
    %cst_20 = arith.constant dense<0.000000e+00> : vector<128x128xf32>
    %23 = tpu.matmul %21, %22, %cst_20 {dimension_numbers = #tpu.dot_dimension_numbers<[1], [0], [0], [1], [0, 0, 1, 1], [], []>} : vector<128x128xf32>, vector<128x128xf32>, vector<128x128xf32> -> vector<128x128xf32>
    %c0_21 = arith.constant 0 : index
    %c0_22 = arith.constant 0 : index
    %24 = vector.load %arg9[%c0_21, %c0_22] : memref<1x128xf32, #tpu.memory_space<vmem>>, vector<1x128xf32>
    %25 = vector.broadcast %24 : vector<1x128xf32> to vector<128x128xf32>
    %26 = arith.addf %23, %25 : vector<128x128xf32>
    %cst_23 = arith.constant 0.000000e+00 : f32
    %27 = vector.broadcast %cst_23 : f32 to vector<128x128xf32>
    %28 = arith.maximumf %26, %27 : vector<128x128xf32>
    %c0_24 = arith.constant 0 : index
    %c0_25 = arith.constant 0 : index
    %29 = vector.load %arg10[%c0_24, %c0_25] : memref<128x256xf32, #tpu.memory_space<vmem>>, vector<128x256xf32>
    %cst_26 = arith.constant dense<0.000000e+00> : vector<128x256xf32>
    %30 = tpu.matmul %28, %29, %cst_26 {dimension_numbers = #tpu.dot_dimension_numbers<[1], [0], [0], [1], [0, 0, 1, 1], [], []>} : vector<128x128xf32>, vector<128x256xf32>, vector<128x256xf32> -> vector<128x256xf32>
    %31 = vector.extract_strided_slice %30 {offsets = [0, 0], sizes = [128, 128], strides = [1, 1]} : vector<128x256xf32> to vector<128x128xf32>
    %32 = vector.extract_strided_slice %30 {offsets = [0, 128], sizes = [128, 128], strides = [1, 1]} : vector<128x256xf32> to vector<128x128xf32>
    %c0_27 = arith.constant 0 : index
    %c0_28 = arith.constant 0 : index
    %33 = vector.load %arg11[%c0_27, %c0_28] : memref<128x128xf32, #tpu.memory_space<vmem>>, vector<128x128xf32>
    %cst_29 = arith.constant dense<0.000000e+00> : vector<128x128xf32>
    %34 = tpu.matmul %31, %33, %cst_29 {dimension_numbers = #tpu.dot_dimension_numbers<[1], [0], [0], [1], [0, 0, 1, 1], [], []>} : vector<128x128xf32>, vector<128x128xf32>, vector<128x128xf32> -> vector<128x128xf32>
    %c0_30 = arith.constant 0 : index
    %c0_31 = arith.constant 0 : index
    %35 = vector.load %arg12[%c0_30, %c0_31] : memref<1x128xf32, #tpu.memory_space<vmem>>, vector<1x128xf32>
    %36 = vector.broadcast %35 : vector<1x128xf32> to vector<128x128xf32>
    %37 = arith.addf %34, %36 : vector<128x128xf32>
    %c0_32 = arith.constant 0 : index
    %c0_33 = arith.constant 0 : index
    %38 = vector.load %arg15[%c0_32, %c0_33] : memref<128x128xf32, #tpu.memory_space<vmem>>, vector<128x128xf32>
    tpu.vector_store %arg15[%c0_32, %c0_33], %37 {strides = array<i32>} : memref<128x128xf32, #tpu.memory_space<vmem>>, vector<128x128xf32>,
    %c0_34 = arith.constant 0 : index
    %c0_35 = arith.constant 0 : index
    %39 = vector.load %arg13[%c0_34, %c0_35] : memref<128x128xf32, #tpu.memory_space<vmem>>, vector<128x128xf32>
    %cst_36 = arith.constant dense<0.000000e+00> : vector<128x128xf32>
    %40 = tpu.matmul %32, %39, %cst_36 {dimension_numbers = #tpu.dot_dimension_numbers<[1], [0], [0], [1], [0, 0, 1, 1], [], []>} : vector<128x128xf32>, vector<128x128xf32>, vector<128x128xf32> -> vector<128x128xf32>
    %c0_37 = arith.constant 0 : index
    %c0_38 = arith.constant 0 : index
    %41 = vector.load %arg14[%c0_37, %c0_38] : memref<1x128xf32, #tpu.memory_space<vmem>>, vector<1x128xf32>
    %42 = vector.broadcast %41 : vector<1x128xf32> to vector<128x128xf32>
    %43 = arith.addf %40, %42 : vector<128x128xf32>
    %c0_39 = arith.constant 0 : index
    %c0_40 = arith.constant 0 : index
    %44 = vector.load %arg16[%c0_39, %c0_40] : memref<128x128xf32, #tpu.memory_space<vmem>>, vector<128x128xf32>
    tpu.vector_store %arg16[%c0_39, %c0_40], %43 {strides = array<i32>} : memref<128x128xf32, #tpu.memory_space<vmem>>, vector<128x128xf32>,
    return
  }
  func.func @transform_0(%arg0: i32) -> (i32, i32) {
    %c0_i32 = arith.constant 0 : i32
    %c0_i32_0 = arith.constant 0 : i32
    return %arg0, %c0_i32 : i32, i32
  }
  func.func @transform_1(%arg0: i32) -> (i32, i32) {
    %c0_i32 = arith.constant 0 : i32
    %c0_i32_0 = arith.constant 0 : i32
    %c0_i32_1 = arith.constant 0 : i32
    return %c0_i32, %c0_i32_0 : i32, i32
  }
  func.func @transform_2(%arg0: i32) -> (i32, i32) {
    %c0_i32 = arith.constant 0 : i32
    %c0_i32_0 = arith.constant 0 : i32
    %c0_i32_1 = arith.constant 0 : i32
    return %c0_i32, %c0_i32_0 : i32, i32
  }
  func.func @transform_3(%arg0: i32) -> (i32, i32) {
    %c0_i32 = arith.constant 0 : i32
    %c0_i32_0 = arith.constant 0 : i32
    %c0_i32_1 = arith.constant 0 : i32
    return %c0_i32, %c0_i32_0 : i32, i32
  }
  func.func @transform_4(%arg0: i32) -> (i32, i32) {
    %c0_i32 = arith.constant 0 : i32
    %c0_i32_0 = arith.constant 0 : i32
    %c0_i32_1 = arith.constant 0 : i32
    return %c0_i32, %c0_i32_0 : i32, i32
  }
  func.func @transform_5(%arg0: i32) -> (i32, i32) {
    %c0_i32 = arith.constant 0 : i32
    %c0_i32_0 = arith.constant 0 : i32
    %c0_i32_1 = arith.constant 0 : i32
    return %c0_i32, %c0_i32_0 : i32, i32
  }
  func.func @transform_6(%arg0: i32) -> (i32, i32) {
    %c0_i32 = arith.constant 0 : i32
    %c0_i32_0 = arith.constant 0 : i32
    %c0_i32_1 = arith.constant 0 : i32
    return %c0_i32, %c0_i32_0 : i32, i32
  }
  func.func @transform_7(%arg0: i32) -> (i32, i32) {
    %c0_i32 = arith.constant 0 : i32
    %c0_i32_0 = arith.constant 0 : i32
    %c0_i32_1 = arith.constant 0 : i32
    return %c0_i32, %c0_i32_0 : i32, i32
  }
  func.func @transform_8(%arg0: i32) -> (i32, i32) {
    %c0_i32 = arith.constant 0 : i32
    %c0_i32_0 = arith.constant 0 : i32
    %c0_i32_1 = arith.constant 0 : i32
    return %c0_i32, %c0_i32_0 : i32, i32
  }
  func.func @transform_9(%arg0: i32) -> (i32, i32) {
    %c0_i32 = arith.constant 0 : i32
    %c0_i32_0 = arith.constant 0 : i32
    %c0_i32_1 = arith.constant 0 : i32
    return %c0_i32, %c0_i32_0 : i32, i32
  }
  func.func @transform_10(%arg0: i32) -> (i32, i32) {
    %c0_i32 = arith.constant 0 : i32
    %c0_i32_0 = arith.constant 0 : i32
    %c0_i32_1 = arith.constant 0 : i32
    return %c0_i32, %c0_i32_0 : i32, i32
  }
  func.func @transform_11(%arg0: i32) -> (i32, i32) {
    %c0_i32 = arith.constant 0 : i32
    %c0_i32_0 = arith.constant 0 : i32
    %c0_i32_1 = arith.constant 0 : i32
    return %c0_i32, %c0_i32_0 : i32, i32
  }
  func.func @transform_12(%arg0: i32) -> (i32, i32) {
    %c0_i32 = arith.constant 0 : i32
    %c0_i32_0 = arith.constant 0 : i32
    %c0_i32_1 = arith.constant 0 : i32
    return %c0_i32, %c0_i32_0 : i32, i32
  }
  func.func @transform_13(%arg0: i32) -> (i32, i32) {
    %c0_i32 = arith.constant 0 : i32
    %c0_i32_0 = arith.constant 0 : i32
    %c0_i32_1 = arith.constant 0 : i32
    return %c0_i32, %c0_i32_0 : i32, i32
  }
  func.func @transform_14(%arg0: i32) -> (i32, i32) {
    %c0_i32 = arith.constant 0 : i32
    %c0_i32_0 = arith.constant 0 : i32
    return %arg0, %c0_i32 : i32, i32
  }
  func.func @transform_15(%arg0: i32) -> (i32, i32) {
    %c0_i32 = arith.constant 0 : i32
    %c0_i32_0 = arith.constant 0 : i32
    return %arg0, %c0_i32 : i32, i32
  }
}

</mosaic_0001>

<bundles_post_ra>
// kernel: tpu_custom_call.1
= control target key start
LH: loop header
LB: loop body
LE: loop exit
PB: predicated region body
PF: predicated region fallthrough
CT: control target
= control target key end

     0   :  { %s4053_s0 = inlined_call_operand.hbm [shape: f32[256,128], index: 0, kind: input, shape index: {}]   ;;  %s4054_s1 = inlined_call_operand.hbm [shape: f32[128,128], index: 1, kind: input, shape index: {}]   ;;  %s4055_s2 = inlined_call_operand.vmem [shape: f32[1,128], index: 2, kind: input, shape index: {}]   ;;  %s4056_s3 = inlined_call_operand.hbm [shape: f32[128,128], index: 3, kind: input, shape index: {}]   ;;  %s4057_s4 = inlined_call_operand.vmem [shape: f32[1,128], index: 4, kind: input, shape index: {}]   ;;  %s4058_s5 = inlined_call_operand.hbm [shape: f32[128,128], index: 5, kind: input, shape index: {}]   ;;  %s4059_s6 = inlined_call_operand.vmem [shape: f32[1,128], index: 6, kind: input, shape index: {}]   ;;  %s4060_s7 = inlined_call_operand.hbm [shape: f32[128,128], index: 7, kind: input, shape index: {}]   ;;  %s4061_s8 = inlined_call_operand.vmem [shape: f32[1,128], index: 8, kind: input, shape index: {}]   ;;  %s4062_s9 = inlined_call_operand.hbm [shape: f32[128,256], index: 9, kind: input, shape index: {}]   ;;  %s4063_s10 = inlined_call_operand.hbm [shape: f32[128,128], index: 10, kind: input, shape index: {}]   ;;  %s4064_s11 = inlined_call_operand.vmem [shape: f32[1,128], index: 11, kind: input, shape index: {}]   ;;  %s4065_s12 = inlined_call_operand.hbm [shape: f32[128,128], index: 12, kind: input, shape index: {}]   ;;  %s4066_s13 = inlined_call_operand.vmem [shape: f32[1,128], index: 13, kind: input, shape index: {}]   ;;  %s4067_s14 = inlined_call_operand.hbm [shape: f32[256,128], index: 14, kind: output, shape index: {0}]   ;;  %s4068_s15 = inlined_call_operand.hbm [shape: f32[256,128], index: 15, kind: output, shape index: {1}]  }
   0x1   :  { %4078 = sst [smem:[#allocation26_spill]] %s4054_s1 }
   0x2   :  { %4079 = sst [smem:[#allocation27_spill]] %s4057_s4 }
   0x3   :  { %4080 = sst [smem:[#allocation28_spill]] %s4058_s5 }
   0x4   :  { %4081 = sst [smem:[#allocation29_spill]] %s4059_s6 }
   0x5   :  { %4082 = sst [smem:[#allocation30_spill]] %s4061_s8 }
   0x6   :  { %4083 = sst [smem:[#allocation31_spill]] %s4064_s11 }
   0x7   :  { %4084 = sst [smem:[#allocation32_spill]] %s4066_s13 }
   0x8   :  { %4085 = sst [smem:[#allocation33_spill]] %s4067_s14 }
   0x9   :  { %4086 = sst [smem:[#allocation34_spill]] %s4068_s15 }
   0xa   :  { %21 = vsyncpa [#allocation3], 0 }
   0xb   :  { %23 = vsyncpa [#allocation3 + $0x1], 0 }
   0xc   :  { %24 = vsyncpa [#allocation6], 0 }
   0xd   :  { %25 = vsyncpa [#allocation9], 0 }
   0xe   :  { %26 = vsyncpa [#allocation12], 0 }
   0xf   :  { %27 = vsyncpa [#allocation15], 0 }
  0x10   :  { %28 = vsyncpa [#allocation4], 0 }
  0x11   :  { %30 = vsyncpa [#allocation4 + $0x1], 0 }
  0x12   :  { %31 = vsyncpa [#allocation18], 0 }
  0x13   :  { %33 = vsyncpa [#allocation18 + $0x1], 0  ;;  %s3510_s18 = smov 0   ;;  %s3512_s19 = smov 0  }
  0x14   :  { %s3514_s20 = smov 0   ;;  %s3516_s21 = smov 0  }
  0x15 LB: > { %s3413_s22 = smov [#allocation5]   ;;  %s3531_s24 = sadd.s32 4294967295, %s3411_s21   ;;  %s3411_s21 = sphi %s3516_s21, %s4121_s21   ;;  %s3407_s20 = sphi %s3514_s20, %s4120_s20   ;;  %s3403_s19 = sphi %s3512_s19, %s4119_s19   ;;  %s3399_s18 = sphi %s3510_s18, %s4118_s18  }
  0x16   : > { %s407_s23 = sshll.u32 %s3413_s22, 4  ;;  %p2150_p0 = scmp.ge.s32.totalorder %s3411_s21, 1  ;;  %s3536_s23 = int_to_ptr.vmem [resolvable:$true] %s407_s23 }
  0x17   : > { %p4075_p1 = scmp.eq.s32.totalorder %s3531_s24, 0  ;;  %p395_p2 = scmp.lt.s32.totalorder %s3411_s21, 3 }
  0x18   : > { %s3414_s26 = smov [#allocation8]   ;;  %s3415_s29 = smov [#allocation11]  }
  0x19   : > { %p3538_p3 = pnand %p2150_p0, %p395_p2  ;;  %s439_s27 = sshll.u32 %s3414_s26, 4  ;;  %s3551_s27 = int_to_ptr.vmem [resolvable:$true] %s439_s27 }
  0x1a   : > { %s471_s30 = sshll.u32 %s3415_s29, 4  ;;  %s4089_s1 = sld [smem:[#allocation26_spill]]  ;;  %s3553_s30 = int_to_ptr.vmem [resolvable:$true] %s471_s30 }
  0x1b   : > { %s4087_s25 = scalar_select %p3538_p3, 1, 0 }
  0x1c   : > { %p2976_p5 = pneg %p3538_p3 }
  0x1e   : > { %p3547_p6 = pnand %p2976_p5, %p4075_p1 }
  0x20   : > { %s3071_s22 = scalar_lea.hbm %s4089_s1, 2048  ;;  %p3563_p8 = pneg %p3547_p6 }
  0x21   : > { %p3072_p7 = scmp.ne.s32.totalorder %s4089_s1, %s3071_s22  ;;  %p3078_p11 = scmp.lt.u32.totalorder %s3071_s22, %s4089_s1 }
  0x23   : > { %p3074_p9 = pnand %p3563_p8, %p3072_p7 }
  0x25   : > { %p3075_p10 = pneg %p3074_p9 }
  0x27   : > { %p3080_p12 = pnand %p3078_p11, %p3075_p10 }
  0x29   : > { %3083 = shalt.err (!%p3080_p12)
}
  0x2a   : > { %s3084_s13 = scalar_lea.vmem %s3536_s23, 2048  ;;  %p3092_p5 = scmp.lt.s32.totalorder %s3536_s23, %s3536_s23 }
  0x2b   : > { %p3085_p13 = scmp.ne.s32.totalorder %s3536_s23, %s3084_s13  ;;  %p3093_p4 = scmp.lt.s32.totalorder %s3084_s13, %s3084_s13 }
  0x2d   : > { %p3087_p0 = pnand %p3085_p13, %p3563_p8  ;;  %p3094_p7 = por %p3093_p4, %p3092_p5 }
  0x2f   : > { %p3088_p2 = pneg %p3087_p0 }
  0x31   : > { %p3095_p9 = pnand %p3094_p7, %p3088_p2 }
  0x33   : > { %3098 = shalt.err (!%p3095_p9)
}
  0x34   : > { %s4071_s15 = smov 128   ;;  %s4073_s14 = smov 8  }
  0x35   : > { %2979 = dma.hbm_to_vmem [thread:$0]  (!%p3547_p6), %s4089_s1, 2048, %s3536_s23, [#allocation6], %s4071_s15, %s4071_s15, %s4073_s14  }
  0x36   : > { %s4091_s5 = sld [smem:[#allocation28_spill]] }
  0x3c   : > { %s3099_s13 = scalar_lea.hbm %s4091_s5, 2048 }
  0x3d   : > { %p3100_p4 = scmp.ne.s32.totalorder %s4091_s5, %s3099_s13  ;;  %p3106_p12 = scmp.lt.u32.totalorder %s3099_s13, %s4091_s5 }
  0x3f   : > { %p3102_p10 = pnand %p3100_p4, %p3563_p8 }
  0x41   : > { %p3103_p11 = pneg %p3102_p10 }
  0x43   : > { %p3108_p13 = pnand %p3106_p12, %p3103_p11 }
  0x45   : > { %3111 = shalt.err (!%p3108_p13)
}
  0x46   : > { %s3112_s23 = scalar_lea.vmem %s3551_s27, 2048  ;;  %p3120_p7 = scmp.lt.s32.totalorder %s3551_s27, %s3551_s27 }
  0x47   : > { %p3113_p0 = scmp.ne.s32.totalorder %s3551_s27, %s3112_s23  ;;  %p3121_p9 = scmp.lt.s32.totalorder %s3112_s23, %s3112_s23 }
  0x49   : > { %p3115_p2 = pnand %p3113_p0, %p3563_p8  ;;  %p3122_p4 = por %p3121_p9, %p3120_p7 }
  0x4b   : > { %p3116_p5 = pneg %p3115_p2 }
  0x4d   : > { %p3123_p10 = pnand %p3122_p4, %p3116_p5 }
  0x4f   : > { %3126 = shalt.err (!%p3123_p10)
}
  0x50   : > { %2985 = dma.hbm_to_vmem [thread:$0]  (!%p3547_p6), %s4091_s5, 2048, %s3551_s27, [#allocation9], %s4071_s15, %s4071_s15, %s4073_s14  }
  0x51   : > { %s3127_s16 = scalar_lea.hbm %s4062_s9, 4096 }
  0x52   : > { %p3128_p11 = scmp.ne.s32.totalorder %s4062_s9, %s3127_s16  ;;  %p3134_p0 = scmp.lt.u32.totalorder %s3127_s16, %s4062_s9 }
  0x54   : > { %p3130_p12 = pnand %p3128_p11, %p3563_p8 }
  0x56   : > { %p3131_p13 = pneg %p3130_p12 }
  0x58   : > { %p3136_p2 = pnand %p3134_p0, %p3131_p13 }
  0x5a   : > { %3139 = shalt.err (!%p3136_p2)
}
  0x5b   : > { %s3140_s27 = scalar_lea.vmem %s3553_s30, 4096  ;;  %p3148_p4 = scmp.lt.s32.totalorder %s3553_s30, %s3553_s30 }
  0x5c   : > { %p3141_p5 = scmp.ne.s32.totalorder %s3553_s30, %s3140_s27  ;;  %p3149_p10 = scmp.lt.s32.totalorder %s3140_s27, %s3140_s27 }
  0x5e   : > { %p3143_p7 = pnand %p3141_p5, %p3563_p8  ;;  %p3150_p11 = por %p3149_p10, %p3148_p4 }
  0x60   : > { %p3144_p9 = pneg %p3143_p7 }
  0x62   : > { %p3151_p12 = pnand %p3150_p11, %p3144_p9 }
  0x64   : > { %3154 = shalt.err (!%p3151_p12)
}
  0x65   : > { %s3418_s23 = smov 256   ;;  %s3419_s4 = smov 16  }
  0x66   : > { %2991 = dma.hbm_to_vmem [thread:$0]  (!%p3547_p6), %s4062_s9, 4096, %s3553_s30, [#allocation12], %s3418_s23, %s3418_s23, %s3419_s4  }
  0x67   : > { %s3420_s11 = smov [#allocation7]   ;;  %s3421_s17 = smov [#allocation10]  }
  0x68   : > { %s423_s16 = sshll.u32 %s3420_s11, 4  ;;  %s455_s22 = sshll.u32 %s3421_s17, 4  ;;  %s424_s16 = int_to_ptr.vmem [resolvable:$true] %s423_s16  ;;  %s456_s22 = int_to_ptr.vmem [resolvable:$true] %s455_s22 }
  0x69   : > { %s3155_s27 = scalar_lea.hbm %s4056_s3, 2048 }
  0x6a   : > { %p3156_p13 = scmp.ne.s32.totalorder %s4056_s3, %s3155_s27  ;;  %p3162_p5 = scmp.lt.u32.totalorder %s3155_s27, %s4056_s3 }
  0x6c   : > { %p3158_p0 = pnand %p3156_p13, %p3563_p8 }
  0x6e   : > { %p3159_p2 = pneg %p3158_p0 }
  0x70   : > { %p3164_p7 = pnand %p3162_p5, %p3159_p2 }
  0x72   : > { %3167 = shalt.err (!%p3164_p7)
}
  0x73   : > { %s3168_s30 = scalar_lea.vmem %s424_s16, 2048  ;;  %p3176_p11 = scmp.lt.s32.totalorder %s424_s16, %s424_s16 }
  0x74   : > { %p3169_p9 = scmp.ne.s32.totalorder %s424_s16, %s3168_s30  ;;  %p3177_p12 = scmp.lt.s32.totalorder %s3168_s30, %s3168_s30 }
  0x76   : > { %p3171_p4 = pnand %p3169_p9, %p3563_p8  ;;  %p3178_p1 = por %p3177_p12, %p3176_p11 }
  0x78   : > { %p3172_p10 = pneg %p3171_p4 }
  0x7a   : > { %p3179_p3 = pnand %p3178_p1, %p3172_p10 }
  0x7c   : > { %3182 = shalt.err (!%p3179_p3)
}
  0x7d   : > { %s4092_s15 = smov 8   ;;  %s4093_s14 = smov 128  }
  0x7e   : > { %2982 = dma.hbm_to_vmem [thread:$0]  (!%p3547_p6), %s4056_s3, 2048, %s424_s16, [#allocation6], %s4093_s14, %s4093_s14, %s4092_s15  }
  0x7f   : > { %s3183_s6 = scalar_lea.hbm %s4060_s7, 2048 }
  0x80   : > { %p3184_p1 = scmp.ne.s32.totalorder %s4060_s7, %s3183_s6  ;;  %p3190_p0 = scmp.lt.u32.totalorder %s3183_s6, %s4060_s7 }
  0x82   : > { %p3186_p3 = pnand %p3184_p1, %p3563_p8 }
  0x84   : > { %p3187_p13 = pneg %p3186_p3 }
  0x86   : > { %p3192_p2 = pnand %p3190_p0, %p3187_p13 }
  0x88   : > { %3195 = shalt.err (!%p3192_p2)
}
  0x89   : > { %s3196_s13 = scalar_lea.vmem %s456_s22, 2048  ;;  %p3204_p4 = scmp.lt.s32.totalorder %s456_s22, %s456_s22 }
  0x8a   : > { %p3197_p5 = scmp.ne.s32.totalorder %s456_s22, %s3196_s13  ;;  %p3205_p10 = scmp.lt.s32.totalorder %s3196_s13, %s3196_s13 }
  0x8c   : > { %p3199_p7 = pnand %p3197_p5, %p3563_p8  ;;  %p3206_p11 = por %p3205_p10, %p3204_p4 }
  0x8e   : > { %p3200_p9 = pneg %p3199_p7 }
  0x90   : > { %p3207_p12 = pnand %p3206_p11, %p3200_p9 }
  0x92   : > { %3210 = shalt.err (!%p3207_p12)
}
  0x93   : > { %2988 = dma.hbm_to_vmem [thread:$0]  (!%p3547_p6), %s4060_s7, 2048, %s456_s22, [#allocation9], %s4093_s14, %s4093_s14, %s4092_s15  }
  0x94   : > { %s3422_s30 = smov [#allocation13]   ;;  %s3423_s5 = smov [#allocation14]  }
  0x95   : > { %s484_s1 = sshll.u32 %s3422_s30, 4  ;;  %s500_s23 = sshll.u32 %s3423_s5, 4  ;;  %s485_s1 = int_to_ptr.vmem [resolvable:$true] %s484_s1  ;;  %s501_s23 = int_to_ptr.vmem [resolvable:$true] %s500_s23 }
  0x96   : > { %s3211_s8 = scalar_lea.hbm %s4063_s10, 2048 }
  0x97   : > { %p3212_p1 = scmp.ne.s32.totalorder %s4063_s10, %s3211_s8  ;;  %p3218_p0 = scmp.lt.u32.totalorder %s3211_s8, %s4063_s10 }
  0x99   : > { %p3214_p3 = pnand %p3212_p1, %p3563_p8 }
  0x9b   : > { %p3215_p13 = pneg %p3214_p3 }
  0x9d   : > { %p3220_p2 = pnand %p3218_p0, %p3215_p13 }
  0x9f   : > { %3223 = shalt.err (!%p3220_p2)
}
  0xa0   : > { %s3224_s22 = scalar_lea.vmem %s485_s1, 2048  ;;  %p3232_p4 = scmp.lt.s32.totalorder %s485_s1, %s485_s1 }
  0xa1   : > { %p3225_p5 = scmp.ne.s32.totalorder %s485_s1, %s3224_s22  ;;  %p3233_p10 = scmp.lt.s32.totalorder %s3224_s22, %s3224_s22 }
  0xa3   : > { %p3227_p7 = pnand %p3225_p5, %p3563_p8  ;;  %p3234_p11 = por %p3233_p10, %p3232_p4 }
  0xa5   : > { %p3228_p9 = pneg %p3227_p7 }
  0xa7   : > { %p3235_p12 = pnand %p3234_p11, %p3228_p9 }
  0xa9   : > { %3238 = shalt.err (!%p3235_p12)
}
  0xaa   : > { %2994 = dma.hbm_to_vmem [thread:$0]  (!%p3547_p6), %s4063_s10, 2048, %s485_s1, [#allocation12], %s4093_s14, %s4093_s14, %s4092_s15  }
  0xab   : > { %s3239_s4 = scalar_lea.hbm %s4065_s12, 2048 }
  0xac   : > { %p3240_p1 = scmp.ne.s32.totalorder %s4065_s12, %s3239_s4  ;;  %p3246_p0 = scmp.lt.u32.totalorder %s3239_s4, %s4065_s12 }
  0xae   : > { %p3242_p3 = pnand %p3240_p1, %p3563_p8 }
  0xb0   : > { %p3243_p13 = pneg %p3242_p3 }
  0xb2   : > { %p3248_p2 = pnand %p3246_p0, %p3243_p13 }
  0xb4   : > { %3251 = shalt.err (!%p3248_p2)
}
  0xb5   : > { %s3252_s29 = scalar_lea.vmem %s501_s23, 2048  ;;  %p3260_p4 = scmp.lt.s32.totalorder %s501_s23, %s501_s23 }
  0xb6   : > { %p3253_p5 = scmp.ne.s32.totalorder %s501_s23, %s3252_s29  ;;  %p3261_p10 = scmp.lt.s32.totalorder %s3252_s29, %s3252_s29 }
  0xb8   : > { %p3255_p7 = pnand %p3253_p5, %p3563_p8  ;;  %p3262_p11 = por %p3261_p10, %p3260_p4 }
  0xba   : > { %p3256_p9 = pneg %p3255_p7 }
  0xbc   : > { %p3263_p12 = pnand %p3262_p11, %p3256_p9 }
  0xbe   : > { %3266 = shalt.err (!%p3263_p12)
}
  0xbf   : > { %2997 = dma.hbm_to_vmem [thread:$0]  (!%p3547_p6), %s4065_s12, 2048, %s501_s23, [#allocation15], %s4093_s14, %s4093_s14, %s4092_s15  }
  0xc0   : > { %s2149_s28 = sadd.s32 4294967294, %s3411_s21   ;;  %s3722_s26 = sadd.s32 1, %s3411_s21  }
  0xc1   : > { %s46_s22 = sadd.s32 1, %s3407_s20  ;;  %s43_s16 = ssub.s32 %s3411_s21, %s3722_s26 }
  0xc2   : > { %p53_p8 = scmp.ne.s32.totalorder %s3407_s20, %s3403_s19  ;;  %p44_p1 = scmp.eq.s32.totalorder %s43_s16, 0 }
  0xc3   : > { %p54_p3 = scmp.eq.s32.totalorder %s3411_s21, 0  ;;  %p59_p13 = scmp.ne.s32.totalorder %s3403_s19, %s3399_s18 }
  0xc4   : > { %p356_p0 = scmp.eq.s32.totalorder %s3531_s24, 1  ;;  %p4094_p5 = scmp.eq.s32.totalorder %s3531_s24, 0 }
  0xc5   : > { %s3734_s27 = scalar_select %p44_p1, %s3407_s20, %s46_s22  }
  0xc6   : > { %p55_p2 = por %p54_p3, %p53_p8  ;;  %p3738_p7 = por %p4094_p5, %p59_p13 }
  0xc7   : > { %p3742_p6 = por %p356_p0, %p53_p8  ;;  %p362_p9 = scmp.eq.s32.totalorder %s2149_s28, 1 }
  0xc8   : > { %p3016_p4 = scmp.lt.s32.totalorder %s3411_s21, 2  ;;  %s517_s5 = sand.u32 1, %s3407_s20  }
  0xc9   : > { %s4096_s23 = scalar_select %p3742_p6, 1, 0 }
  0xca   : > { %p3748_p10 = por %p362_p9, %p59_p13  ;;  %s2159_s6 = sshll.u32 %s517_s5, 7 }
  0xcb   : > { %s2187_s8 = sshll.u32 %s3411_s21, 11  ;;  %s521_s1 = scalar_lea.vmem [#allocation2], %s2159_s6 }
  0xcc   : > { %s4097_s4 = scalar_select %p3748_p10, 1, 0 }
  0xcd   : > { %s3756_s29 = scalar_lea.hbm %s4053_s0, %s2187_s8  ;;  %s528_s13 = sshll.u32 %s521_s1, 4  ;;  %s3762_s13 = int_to_ptr.vmem [resolvable:$true] %s528_s13 }
  0xce   : > { %p3758_p11 = pnand %p3016_p4, %p55_p2  ;;  %s3764_s22 = scalar_lea.sflag [#allocation3], %s517_s5 }
  0xcf   : > { %s3267_s16 = scalar_lea.hbm %s3756_s29, 2048  ;;  %s3272_s11 = scalar_lea.hbm %s4053_s0, 4096 }
  0xd0   : > { %p3268_p12 = scmp.ne.s32.totalorder %s3756_s29, %s3267_s16  ;;  %p3269_p8 = pneg %p3758_p11 }
  0xd1   : > { %p3273_p13 = scmp.lt.u32.totalorder %s3756_s29, %s4053_s0  ;;  %p3274_p0 = scmp.lt.u32.totalorder %s3272_s11, %s3267_s16 }
  0xd2   : > { %p3270_p1 = pnand %p3269_p8, %p3268_p12  ;;  %p3276_p5 = scmp.lt.u32.totalorder %s3267_s16, %s3756_s29 }
  0xd3   : > { %p3275_p2 = por %p3274_p0, %p3273_p13 }
  0xd4   : > { %p3271_p3 = pneg %p3270_p1 }
  0xd5   : > { %p3277_p9 = por %p3276_p5, %p3275_p2 }
  0xd7   : > { %p3278_p4 = pnand %p3277_p9, %p3271_p3 }
  0xd9   : > { %3281 = shalt.err (!%p3278_p4)
}
  0xda   : > { %s3282_s5 = scalar_lea.vmem %s3762_s13, 2048  ;;  %s3424_s6 = smov [#allocation2]  }
  0xdb   : > { %p3283_p12 = scmp.ne.s32.totalorder %s3762_s13, %s3282_s5  ;;  %s3287_s8 = sshll.u32 %s3424_s6, 4  ;;  %s3288_s8 = int_to_ptr.vmem [resolvable:$false] %s3287_s8 }
  0xdc   : > { %s3289_s17 = scalar_lea.vmem %s3288_s8, 4096  ;;  %p3290_p6 = scmp.lt.s32.totalorder %s3762_s13, %s3288_s8 }
  0xdd   : > { %p3285_p1 = pnand %p3283_p12, %p3269_p8  ;;  %p3291_p13 = scmp.lt.s32.totalorder %s3289_s17, %s3282_s5 }
  0xdf   : > { %p3286_p10 = pneg %p3285_p1  ;;  %p3292_p0 = por %p3291_p13, %p3290_p6 }
  0xe1   : > { %p3293_p2 = pnand %p3292_p0, %p3286_p10 }
  0xe3   : > { %3296 = shalt.err (!%p3293_p2)
}
  0xe4   : > { %3001 = dma.hbm_to_vmem [thread:$0]  (!%p3758_p11), %s3756_s29, 2048, %s3762_s13, %s3764_s22, %s4093_s14, %s4093_s14, %s4092_s15  }
  0xe5   : > { %p4099_p8 = scmp.ne.s32.totalorder %s4087_s25, 0 }
  0xe6   : > { %s3798_s16 = sand.u32 (!%p4099_p8), 1, %s3403_s19  }
  0xe7   : > { %540 = sbr.rel (%p4099_p8) target bundleno = 1691 (0x69b), region = 76  ;;  %s3801_s11 = sshll.u32 (!%p4099_p8), %s3798_s16, 7 }
  0xe8   : > { %s543_s28 = scalar_lea.sflag (!%p4099_p8), [#allocation3], %s3798_s16  ;;  %s3805_s1 = scalar_lea.vmem (!%p4099_p8), [#allocation2], %s3801_s11 }
  0xee   : > { %3370 = dma.done.wait (%p3738_p7), %s543_s28, 2048  }
  0xef   : > { %3372 = vsyncadd (%p3738_p7), %s543_s28, 4294965248  ;;  %p4100_p6 = scmp.eq.s32.totalorder %s3531_s24, 0 }
  0xf1   : > { %3374 = dma.done.wait (%p4100_p6), [#allocation6], 4096   ;;  %p4101_p10 = pmov %p4100_p6 }
  0xf2   : > { %p4102_p11 = pmov %p4100_p6 }
  0xf3   : > { %3376 = vsyncadd (%p4101_p10), [#allocation6], 4294963200 }
  0xf4   : > { %3378 = dma.done.wait (%p4102_p11), [#allocation9], 4096   ;;  %p4103_p3 = pmov %p4100_p6 }
  0xf6   : > { %3380 = vsyncadd (%p4103_p3), [#allocation9], 4294963200  ;;  %p4104_p5 = pmov %p4103_p3 }
  0xf7   : > { %p4105_p9 = pmov %p4103_p3 }
  0xf8   : > { %3382 = dma.done.wait (%p4104_p5), [#allocation12], 6144  }
  0xf9   : > { %3384 = vsyncadd (%p4105_p9), [#allocation12], 4294961152  ;;  %p4106_p7 = pmov %p4103_p3 }
  0xfa   : > { %p4107_p4 = pmov %p4103_p3 }
  0xfb   : > { %3386 = dma.done.wait (%p4106_p7), [#allocation15], 2048  }
  0xfc   : > { %3388 = vsyncadd (%p4107_p4), [#allocation15], 4294965248  ;;  %v645_v0 = vld [vmem:[#allocation5] sm:$0xff]  ;;  %v646_v1 = vld [vmem:[#allocation5 + $0x8] sm:$0xff]  ;;  %s4108_s29 = sld [smem:[#allocation27_spill]]  ;;  %s4109_s5 = sld [smem:[#allocation29_spill]] }
  0xfd   : > { %v647_v2 = vld [vmem:[#allocation5 + $0x10] sm:$0xff]  ;;  %v2718_v3 = vpack.c.bf16 %v646_v1, %v645_v0  ;;  %v648_v4 = vld [vmem:[#allocation5 + $0x18] sm:$0xff]  ;;  %v649_v6 = vld [vmem:[#allocation5 + $0x20] sm:$0xff]  ;;  %s4110_s17 = sld [smem:[#allocation30_spill]]  ;;  %s4111_s25 = sld [smem:[#allocation31_spill]] }
  0xfe   : > { %v2722_v5 = vpack.c.bf16 %v648_v4, %v647_v2  ;;  %v650_v7 = vld [vmem:[#allocation5 + $0x28] sm:$0xff]  ;;  %v629_v9 = vld [vmem:[%s3805_s1] sm:$0xff]  ;;  %v651_v10 = vld [vmem:[#allocation5 + $0x30] sm:$0xff]  ;;  %s3902_s15 = scalar_lea.vmem [#allocation16], %s3801_s11  ;;  %s2188_s14 = sshll.u32 %s3531_s24, 11 }
  0xff   : > { %2719 = vmatprep.subr.bf16.mxu0 %v2718_v3  ;;  %v2726_v8 = vpack.c.bf16 %v650_v7, %v649_v6  ;;  %v652_v11 = vld [vmem:[#allocation5 + $0x38] sm:$0xff]  ;;  %2414 = vmatprep.mubr.f32.mxu0 %v629_v9  ;;  %v653_v13 = vld [vmem:[#allocation5 + $0x40] sm:$0xff]  ;;  %v654_v14 = vld [vmem:[#allocation5 + $0x48] sm:$0xff]  ;;  %s1961_s30 = sshll.u32 %s3902_s15, 4  ;;  %s4112_s22 = sld [smem:[#allocation33_spill]]  ;;  %s3927_s30 = int_to_ptr.vmem [resolvable:$true] %s1961_s30 }
 0x100   : > { %2721 = vmatpush3.bf16.msra.mxu0 %v2718_v3  ;;  %v2730_v12 = vpack.c.bf16 %v652_v11, %v651_v10  ;;  %v829_v15 = vld [vmem:[#allocation7] sm:$0xff]  ;;  %v830_v16 = vld [vmem:[#allocation7 + $0x8] sm:$0xff]  ;;  %v831_v17 = vld [vmem:[#allocation7 + $0x10] sm:$0xff]  ;;  %v2734_v21 = vpack.c.bf16 %v654_v14, %v653_v13  ;;  %s1943_s28 = scalar_lea.sflag [#allocation4], %s3798_s16  ;;  %p4114_p1 = scmp.ne.s32.totalorder %s4096_s23, 0 }
 0x101   : > { %2723 = vmatprep.subr.bf16.mxu0 %v2722_v5  ;;  %v832_v18 = vld [vmem:[#allocation7 + $0x18] sm:$0xff]  ;;  %v2750_v19 = vpack.c.bf16 %v830_v16, %v829_v15  ;;  %v833_v22 = vld [vmem:[#allocation7 + $0x20] sm:$0xff]  ;;  %v834_v23 = vld [vmem:[#allocation7 + $0x28] sm:$0xff] }
 0x102   : > { %v2754_v20 = vpack.c.bf16 %v832_v18, %v831_v17  ;;  %v655_v24 = vld [vmem:[#allocation5 + $0x50] sm:$0xff]  ;;  %v656_v25 = vld [vmem:[#allocation5 + $0x58] sm:$0xff]  ;;  %v2758_v26 = vpack.c.bf16 %v834_v23, %v833_v22  ;;  %v657_v30 = vld [vmem:[#allocation5 + $0x60] sm:$0xff] }
 0x103   : > { %2751 = vmatprep.subr.bf16.mxu1 %v2750_v19  ;;  %v2738_v27 = vpack.c.bf16 %v656_v25, %v655_v24  ;;  %v835_v28 = vld [vmem:[#allocation7 + $0x30] sm:$0xff]  ;;  %v836_v29 = vld [vmem:[#allocation7 + $0x38] sm:$0xff]  ;;  %v658_v31 = vld [vmem:[#allocation5 + $0x68] sm:$0xff] }
 0x104   : > { %2725 = vmatpush3.bf16.msra.mxu0 %v2722_v5  ;;  %2753 = vmatpush3.bf16.msra.mxu1 %v2750_v19  ;;  %v2762_v32 = vpack.c.bf16 %v836_v29, %v835_v28  ;;  %v2742_v33 = vpack.c.bf16 %v658_v31, %v657_v30  ;;  %v837_v34 = vld [vmem:[#allocation7 + $0x40] sm:$0xff]  ;;  %v838_v35 = vld [vmem:[#allocation7 + $0x48] sm:$0xff]  ;;  %v659_v36 = vld [vmem:[#allocation5 + $0x70] sm:$0xff] }
 0x105   : > { %2727 = vmatprep.subr.bf16.mxu0 %v2726_v8  ;;  %2755 = vmatprep.subr.bf16.mxu1 %v2754_v20  ;;  %v660_v37 = vld [vmem:[#allocation5 + $0x78] sm:$0xff]  ;;  %v2766_v38 = vpack.c.bf16 %v838_v35, %v837_v34  ;;  %v839_v40 = vld [vmem:[#allocation7 + $0x50] sm:$0xff]  ;;  %v841_v43 = vld [vmem:[#allocation7 + $0x60] sm:$0xff] }
 0x106   : > { %v2746_v39 = vpack.c.bf16 %v660_v37, %v659_v36  ;;  %v840_v41 = vld [vmem:[#allocation7 + $0x58] sm:$0xff]  ;;  %v842_v44 = vld [vmem:[#allocation7 + $0x68] sm:$0xff]  ;;  %v631_v47 = vld [vmem:[%s3805_s1 + $0x10] sm:$0xff] }
 0x107   : > { %v2770_v42 = vpack.c.bf16 %v840_v41, %v839_v40  ;;  %v630_v45 = vld [vmem:[%s3805_s1 + $0x8] sm:$0xff]  ;;  %v2774_v46 = vpack.c.bf16 %v842_v44, %v841_v43  ;;  %v632_v48 = vld [vmem:[%s3805_s1 + $0x18] sm:$0xff]  ;;  %v633_v49 = vld [vmem:[%s3805_s1 + $0x20] sm:$0xff] }
 0x108   : > { %2729 = vmatpush3.bf16.msra.mxu0 %v2726_v8  ;;  %2757 = vmatpush3.bf16.msra.mxu1 %v2754_v20  ;;  %v634_v50 = vld [vmem:[%s3805_s1 + $0x28] sm:$0xff]  ;;  %v635_v51 = vld [vmem:[%s3805_s1 + $0x30] sm:$0xff]  ;;  %v636_v52 = vld [vmem:[%s3805_s1 + $0x38] sm:$0xff] }
 0x109   : > { %2731 = vmatprep.subr.bf16.mxu0 %v2730_v12  ;;  %2759 = vmatprep.subr.bf16.mxu1 %v2758_v26  ;;  %v637_v53 = vld [vmem:[%s3805_s1 + $0x40] sm:$0xff]  ;;  %v638_v54 = vld [vmem:[%s3805_s1 + $0x48] sm:$0xff]  ;;  %v639_v55 = vld [vmem:[%s3805_s1 + $0x50] sm:$0xff] }
 0x10a   : > { %v640_v56 = vld [vmem:[%s3805_s1 + $0x58] sm:$0xff]  ;;  %v641_v57 = vld [vmem:[%s3805_s1 + $0x60] sm:$0xff]  ;;  %v642_v58 = vld [vmem:[%s3805_s1 + $0x68] sm:$0xff] }
 0x10b   : > { %v643_v59 = vld [vmem:[%s3805_s1 + $0x70] sm:$0xff]  ;;  %v644_v60 = vld [vmem:[%s3805_s1 + $0x78] sm:$0xff]  ;;  %v1013_v0 = vld [vmem:[#allocation8] sm:$0xff]  ;;  %s3297_s1 = scalar_lea.vmem %s3927_s30, 2048 }
 0x10c   : > { %2733 = vmatpush3.bf16.msra.mxu0 %v2730_v12  ;;  %2761 = vmatpush3.bf16.msra.mxu1 %v2758_v26  ;;  %v843_v61 = vld [vmem:[#allocation7 + $0x70] sm:$0xff]  ;;  %v844_v62 = vld [vmem:[#allocation7 + $0x78] sm:$0xff]  ;;  %v1014_v1 = vld [vmem:[#allocation8 + $0x8] sm:$0xff]  ;;  %p3298_p12 = scmp.ne.s32.totalorder %s3927_s30, %s3297_s1 }
 0x10d   : > { %2735 = vmatprep.subr.bf16.mxu0 %v2734_v21  ;;  %2763 = vmatprep.subr.bf16.mxu1 %v2762_v32  ;;  %v2778_v63 = vpack.c.bf16 %v844_v62, %v843_v61  ;;  %v1015_v2 = vld [vmem:[#allocation8 + $0x10] sm:$0xff]  ;;  %v2782_v3 = vpack.c.bf16 %v1014_v1, %v1013_v0  ;;  %v1016_v4 = vld [vmem:[#allocation8 + $0x18] sm:$0xff]  ;;  %v1017_v6 = vld [vmem:[#allocation8 + $0x20] sm:$0xff] }
 0x10e   : > { %v2786_v5 = vpack.c.bf16 %v1016_v4, %v1015_v2  ;;  %v1018_v7 = vld [vmem:[#allocation8 + $0x28] sm:$0xff]  ;;  %v1019_v9 = vld [vmem:[#allocation8 + $0x30] sm:$0xff]  ;;  %v1020_v10 = vld [vmem:[#allocation8 + $0x38] sm:$0xff]  ;;  %p3299_p13 = pnand %p3298_p12, %p4114_p1 }
 0x10f   : > { %v2790_v8 = vpack.c.bf16 %v1018_v7, %v1017_v6  ;;  %v2794_v11 = vpack.c.bf16 %v1020_v10, %v1019_v9  ;;  %v1021_v12 = vld [vmem:[#allocation8 + $0x40] sm:$0xff]  ;;  %v1022_v13 = vld [vmem:[#allocation8 + $0x48] sm:$0xff]  ;;  %v1023_v15 = vld [vmem:[#allocation8 + $0x50] sm:$0xff] }
 0x110   : > { %2737 = vmatpush3.bf16.msra.mxu0 %v2734_v21  ;;  %2765 = vmatpush3.bf16.msra.mxu1 %v2762_v32  ;;  %v2798_v14 = vpack.c.bf16 %v1022_v13, %v1021_v12  ;;  %v1024_v16 = vld [vmem:[#allocation8 + $0x58] sm:$0xff]  ;;  %v1025_v18 = vld [vmem:[#allocation8 + $0x60] sm:$0xff]  ;;  %v1026_v19 = vld [vmem:[#allocation8 + $0x68] sm:$0xff]  ;;  %p3300_p0 = pneg %p3299_p13 }
 0x111   : > { %2739 = vmatprep.subr.bf16.mxu0 %v2738_v27  ;;  %2767 = vmatprep.subr.bf16.mxu1 %v2766_v38  ;;  %v2802_v17 = vpack.c.bf16 %v1024_v16, %v1023_v15  ;;  %v2806_v20 = vpack.c.bf16 %v1026_v19, %v1025_v18  ;;  %v2173_v21 = vld [vmem:[%s4055_s2] ss:$0 sm:$0xff]  ;;  %v1027_v6 = vld [vmem:[#allocation8 + $0x70] sm:$0xff]  ;;  %v1028_v7 = vld [vmem:[#allocation8 + $0x78] sm:$0xff] }
 0x112   : > { %v1197_v9 = vld [vmem:[#allocation10] sm:$0xff]  ;;  %v1198_v10 = vld [vmem:[#allocation10 + $0x8] sm:$0xff]  ;;  %v1200_v13 = vld [vmem:[#allocation10 + $0x18] sm:$0xff] }
 0x113   : > { %v2814_v12 = vpack.c.bf16 %v1198_v10, %v1197_v9  ;;  %v1201_v15 = vld [vmem:[#allocation10 + $0x20] sm:$0xff]  ;;  %v1202_v16 = vld [vmem:[#allocation10 + $0x28] sm:$0xff]  ;;  %v1203_v18 = vld [vmem:[#allocation10 + $0x30] sm:$0xff] }
 0x114   : > { %2741 = vmatpush3.bf16.msra.mxu0 %v2738_v27  ;;  %2769 = vmatpush3.bf16.msra.mxu1 %v2766_v38  ;;  %v1204_v19 = vld [vmem:[#allocation10 + $0x38] sm:$0xff] }
 0x115   : > { %2743 = vmatprep.subr.bf16.mxu0 %v2742_v33  ;;  %2771 = vmatprep.subr.bf16.mxu1 %v2770_v42 }
 0x118   : > { %2745 = vmatpush3.bf16.msra.mxu0 %v2742_v33  ;;  %2773 = vmatpush3.bf16.msra.mxu1 %v2770_v42 }
 0x119   : > { %2747 = vmatprep.subr.bf16.mxu0 %v2746_v39  ;;  %2775 = vmatprep.subr.bf16.mxu1 %v2774_v46 }
 0x11c   : > { %2749 = vmatpush3.bf16.msra.mxu0 %v2746_v39  ;;  %2777 = vmatpush3.bf16.msra.mxu1 %v2774_v46 }
 0x11d   : > { %2779 = vmatprep.subr.bf16.mxu1 %v2778_v63  ;;  %2783 = vmatprep.subr.bf16.mxu0 %v2782_v3 }
 0x11f   : > { %2415 = vmatmul.mubr.f32.vlgmr.msra.gmra.mrb[0].mxu0 %v630_v45 }
 0x120   : > { %2417 = vmatprep.mubr.f32.mxu0 %v631_v47  ;;  %2781 = vmatpush3.bf16.msra.mxu1 %v2778_v63 }
 0x121   : > { %2785 = vmatpush3.bf16.msra.mxu0 %v2782_v3  ;;  %2815 = vmatprep.subr.bf16.mxu1 %v2814_v12 }
 0x122   : > { %2787 = vmatprep.subr.bf16.mxu0 %v2786_v5 }
 0x123   : > { %2418 = vmatmul.mubr.f32.gmra.mrb[2].mxu0 %v632_v48 }
 0x124   : > { %2420 = vmatprep.mubr.f32.mxu0 %v633_v49 }
 0x125   : > { %2789 = vmatpush3.bf16.msra.mxu0 %v2786_v5 }
 0x126   : > { %2791 = vmatprep.subr.bf16.mxu0 %v2790_v8 }
 0x127   : > { %2421 = vmatmul.mubr.f32.gmra.mrb[4].mxu0 %v634_v50 }
 0x128   : > { %2423 = vmatprep.mubr.f32.mxu0 %v635_v51 }
 0x129   : > { %2793 = vmatpush3.bf16.msra.mxu0 %v2790_v8  ;;  %v2810_v8 = vpack.c.bf16 %v1028_v7, %v1027_v6 }
 0x12a   : > { %2795 = vmatprep.subr.bf16.mxu0 %v2794_v11 }
 0x12b   : > { %2424 = vmatmul.mubr.f32.gmra.mrb[6].mxu0 %v636_v52 }
 0x12c   : > { %2426 = vmatprep.mubr.f32.mxu0 %v637_v53 }
 0x12d   : > { %2797 = vmatpush3.bf16.msra.mxu0 %v2794_v11  ;;  %v1199_v11 = vld [vmem:[#allocation10 + $0x10] sm:$0xff] }
 0x12e   : > { %2799 = vmatprep.subr.bf16.mxu0 %v2798_v14 }
 0x12f   : > { %2427 = vmatmul.mubr.f32.gmra.mrb[8].mxu0 %v638_v54 }
 0x130   : > { %2429 = vmatprep.mubr.f32.mxu0 %v639_v55 }
 0x131   : > { %2801 = vmatpush3.bf16.msra.mxu0 %v2798_v14  ;;  %v2818_v14 = vpack.c.bf16 %v1200_v13, %v1199_v11 }
 0x132   : > { %2803 = vmatprep.subr.bf16.mxu0 %v2802_v17 }
 0x133   : > { %2430 = vmatmul.mubr.f32.gmra.mrb[10].mxu0 %v640_v56 }
 0x134   : > { %2432 = vmatprep.mubr.f32.mxu0 %v641_v57 }
 0x135   : > { %2805 = vmatpush3.bf16.msra.mxu0 %v2802_v17  ;;  %v2822_v17 = vpack.c.bf16 %v1202_v16, %v1201_v15  ;;  %v1211_v15 = vld [vmem:[#allocation10 + $0x70] sm:$0xff]  ;;  %v1212_v16 = vld [vmem:[#allocation10 + $0x78] sm:$0xff] }
 0x136   : > { %2807 = vmatprep.subr.bf16.mxu0 %v2806_v20 }
 0x137   : > { %2433 = vmatmul.mubr.f32.gmra.mrb[12].mxu0 %v642_v58 }
 0x138   : > { %2435 = vmatprep.mubr.f32.mxu0 %v643_v59 }
 0x139   : > { %2809 = vmatpush3.bf16.msra.mxu0 %v2806_v20  ;;  %v2826_v20 = vpack.c.bf16 %v1204_v19, %v1203_v18  ;;  %v1382_v18 = vld [vmem:[#allocation11 + $0x8] sm:$0xff]  ;;  %v1384_v19 = vld [vmem:[#allocation11 + $0x18] sm:$0xff] }
 0x13a   : > { %2811 = vmatprep.subr.bf16.mxu0 %v2810_v8 }
 0x13b   : > { %2436 = vmatmul.mubr.f32.gmra.mrb[14].mxu0 %v644_v60 }
 0x13d   : > { %2813 = vmatpush3.bf16.msra.mxu0 %v2810_v8 }
 0x1f2   : > { %v2416_v22 = vpop.f32.mrb[0].mxu0 }
 0x1f3   : > { %v740_v23 = vadd.f32 %v2416_v22, %v2173_v21  ;;  %v734_v24 = vpop.f32.mrb[1].mxu0  ;;  %v1206_v22 = vld [vmem:[#allocation10 + $0x48] sm:$0xff] }
 0x1f4   : > { %v735_v25 = vadd.f32 %v2173_v21, %v734_v24  ;;  %v1207_v24 = vld [vmem:[#allocation10 + $0x50] sm:$0xff] }
 0x1f5   : > { %v814_v28 = vmax.f32 %v740_v23, 0.0 }
 0x1f6   : > { %v2419_v26 = vpop.f32.mrb[2].mxu0  ;;  %v813_v27 = vmax.f32 %v735_v25, 0.0  ;;  %v1208_v25 = vld [vmem:[#allocation10 + $0x58] sm:$0xff] }
 0x1f7   : > { %v750_v29 = vadd.f32 %v2419_v26, %v2173_v21  ;;  %v744_v30 = vpop.f32.mrb[3].mxu0  ;;  %v2834_v26 = vpack.c.bf16 %v1208_v25, %v1207_v24  ;;  %v1388_v24 = vld [vmem:[#allocation11 + $0x38] sm:$0xff] }
 0x1f8   : > { %v745_v31 = vadd.f32 %v2173_v21, %v744_v30  ;;  %2470 = vmatprep.mubr.f32.mxu1 %v813_v27  ;;  %v1209_v27 = vld [vmem:[#allocation10 + $0x60] sm:$0xff] }
 0x1f9   : > { %v816_v32 = vmax.f32 %v750_v29, 0.0  ;;  %2471 = vmatmul.mubr.f32.vlgmr.msra.gmra.mrb[0].mxu1 %v814_v28  ;;  %v1210_v28 = vld [vmem:[#allocation10 + $0x68] sm:$0xff]  ;;  %v2174_v30 = vld [vmem:[%s4108_s29] ss:$0 sm:$0xff] }
 0x1fa   : > { %v815_v33 = vmax.f32 %v745_v31, 0.0  ;;  %v2422_v34 = vpop.f32.mrb[4].mxu0  ;;  %2817 = vmatpush3.bf16.msra.mxu1 %v2814_v12  ;;  %v2838_v29 = vpack.c.bf16 %v1210_v28, %v1209_v27  ;;  %v1385_v27 = vld [vmem:[#allocation11 + $0x20] sm:$0xff]  ;;  %v1387_v28 = vld [vmem:[#allocation11 + $0x30] sm:$0xff] }
 0x1fb   : > { %v760_v35 = vadd.f32 %v2422_v34, %v2173_v21  ;;  %v754_v36 = vpop.f32.mrb[5].mxu0  ;;  %2819 = vmatprep.subr.bf16.mxu1 %v2818_v14 }
 0x1fc   : > { %v755_v37 = vadd.f32 %v2173_v21, %v754_v36  ;;  %2473 = vmatprep.mubr.f32.mxu1 %v815_v33 }
 0x1fd   : > { %v818_v38 = vmax.f32 %v760_v35, 0.0  ;;  %2474 = vmatmul.mubr.f32.gmra.mrb[2].mxu1 %v816_v32 }
 0x1fe   : > { %v817_v39 = vmax.f32 %v755_v37, 0.0  ;;  %v2425_v40 = vpop.f32.mrb[6].mxu0  ;;  %2821 = vmatpush3.bf16.msra.mxu1 %v2818_v14 }
 0x1ff   : > { %v770_v41 = vadd.f32 %v2425_v40, %v2173_v21  ;;  %v764_v42 = vpop.f32.mrb[7].mxu0  ;;  %2823 = vmatprep.subr.bf16.mxu1 %v2822_v17 }
 0x200   : > { %2476 = vmatprep.mubr.f32.mxu1 %v817_v39  ;;  %v765_v43 = vadd.f32 %v2173_v21, %v764_v42 }
 0x201   : > { %2477 = vmatmul.mubr.f32.gmra.mrb[4].mxu1 %v818_v38  ;;  %v820_v44 = vmax.f32 %v770_v41, 0.0 }
 0x202   : > { %v819_v45 = vmax.f32 %v765_v43, 0.0  ;;  %v2428_v46 = vpop.f32.mrb[8].mxu0  ;;  %2825 = vmatpush3.bf16.msra.mxu1 %v2822_v17  ;;  %v2842_v17 = vpack.c.bf16 %v1212_v16, %v1211_v15 }
 0x203   : > { %v780_v47 = vadd.f32 %v2428_v46, %v2173_v21  ;;  %v774_v48 = vpop.f32.mrb[9].mxu0  ;;  %2827 = vmatprep.subr.bf16.mxu1 %v2826_v20 }
 0x204   : > { %2479 = vmatprep.mubr.f32.mxu1 %v819_v45  ;;  %v775_v49 = vadd.f32 %v2173_v21, %v774_v48 }
 0x205   : > { %2480 = vmatmul.mubr.f32.gmra.mrb[6].mxu1 %v820_v44  ;;  %v822_v50 = vmax.f32 %v780_v47, 0.0 }
 0x206   : > { %v821_v51 = vmax.f32 %v775_v49, 0.0  ;;  %v2431_v52 = vpop.f32.mrb[10].mxu0  ;;  %2829 = vmatpush3.bf16.msra.mxu1 %v2826_v20  ;;  %v1381_v20 = vld [vmem:[#allocation11] sm:$0xff] }
 0x207   : > { %v790_v53 = vadd.f32 %v2431_v52, %v2173_v21  ;;  %v784_v54 = vpop.f32.mrb[11].mxu0 }
 0x208   : > { %2482 = vmatprep.mubr.f32.mxu1 %v821_v51  ;;  %v785_v55 = vadd.f32 %v2173_v21, %v784_v54 }
 0x209   : > { %2483 = vmatmul.mubr.f32.gmra.mrb[8].mxu1 %v822_v50  ;;  %v824_v56 = vmax.f32 %v790_v53, 0.0 }
 0x20a   : > { %v823_v57 = vmax.f32 %v785_v55, 0.0  ;;  %v2434_v58 = vpop.f32.mrb[12].mxu0 }
 0x20b   : > { %v800_v59 = vadd.f32 %v2434_v58, %v2173_v21  ;;  %v794_v60 = vpop.f32.mrb[13].mxu0 }
 0x20c   : > { %2485 = vmatprep.mubr.f32.mxu1 %v823_v57  ;;  %v795_v61 = vadd.f32 %v2173_v21, %v794_v60 }
 0x20d   : > { %2486 = vmatmul.mubr.f32.gmra.mrb[10].mxu1 %v824_v56  ;;  %v826_v62 = vmax.f32 %v800_v59, 0.0 }
 0x20e   : > { %v825_v63 = vmax.f32 %v795_v61, 0.0  ;;  %v2437_v0 = vpop.f32.mrb[14].mxu0 }
 0x20f   : > { %v810_v1 = vadd.f32 %v2437_v0, %v2173_v21  ;;  %v804_v2 = vpop.f32.mrb[15].mxu0 }
 0x210   : > { %2488 = vmatprep.mubr.f32.mxu1 %v825_v63  ;;  %v805_v3 = vadd.f32 %v2173_v21, %v804_v2  ;;  %v1205_v21 = vld [vmem:[#allocation10 + $0x40] sm:$0xff] }
 0x211   : > { %2489 = vmatmul.mubr.f32.gmra.mrb[12].mxu1 %v826_v62  ;;  %v828_v4 = vmax.f32 %v810_v1, 0.0  ;;  %v2830_v23 = vpack.c.bf16 %v1206_v22, %v1205_v21  ;;  %v2846_v21 = vpack.c.bf16 %v1384_v19, %v1382_v18  ;;  %v1383_v22 = vld [vmem:[#allocation11 + $0x10] sm:$0xff] }
 0x212   : > { %v827_v5 = vmax.f32 %v805_v3, 0.0  ;;  %v2848_v25 = vpack.c.bf16 %v1383_v22, %v1381_v20 }
 0x213   : > { %2831 = vmatprep.subr.bf16.mxu1 %v2830_v23  ;;  %2847 = vmatprep.subr.bf16.mxu0 %v2846_v21 }
 0x214   : > { %2491 = vmatprep.mubr.f32.mxu1 %v827_v5  ;;  %2833 = vmatpush3.bf16.msra.mxu1 %v2830_v23  ;;  %v1386_v23 = vld [vmem:[#allocation11 + $0x28] sm:$0xff] }
 0x215   : > { %2492 = vmatmul.mubr.f32.gmra.mrb[14].mxu1 %v828_v4  ;;  %2835 = vmatprep.subr.bf16.mxu1 %v2834_v26 }
 0x218   : > { %2837 = vmatpush3.bf16.msra.mxu1 %v2834_v26  ;;  %v2850_v26 = vpack.c.bf16 %v1388_v24, %v1386_v23 }
 0x219   : > { %2839 = vmatprep.subr.bf16.mxu1 %v2838_v29 }
 0x21c   : > { %2841 = vmatpush3.bf16.msra.mxu1 %v2838_v29  ;;  %v1390_v29 = vld [vmem:[#allocation11 + $0x48] sm:$0xff] }
 0x21d   : > { %2843 = vmatprep.subr.bf16.mxu1 %v2842_v17 }
 0x220   : > { %2845 = vmatpush3.bf16.msra.mxu1 %v2842_v17 }
 0x2cc   : > { %v2472_v31 = vpop.f32.mrb[0].mxu1 }
 0x2cd   : > { %v924_v32 = vadd.f32 %v2472_v31, %v2174_v30  ;;  %v918_v33 = vpop.f32.mrb[1].mxu1  ;;  %v2852_v31 = vpack.c.bf16 %v1387_v28, %v1385_v27 }
 0x2ce   : > { %v919_v34 = vadd.f32 %v2174_v30, %v918_v33  ;;  %v1389_v33 = vld [vmem:[#allocation11 + $0x40] sm:$0xff] }
 0x2cf   : > { %v998_v37 = vmax.f32 %v924_v32, 0.0 }
 0x2d0   : > { %v997_v35 = vmax.f32 %v919_v34, 0.0  ;;  %v2475_v36 = vpop.f32.mrb[2].mxu1  ;;  %v1391_v34 = vld [vmem:[#allocation11 + $0x50] sm:$0xff] }
 0x2d1   : > { %v934_v38 = vadd.f32 %v2475_v36, %v2174_v30  ;;  %v928_v39 = vpop.f32.mrb[3].mxu1  ;;  %v1396_v36 = vld [vmem:[#allocation11 + $0x78] sm:$0xff] }
 0x2d2   : > { %v929_v40 = vadd.f32 %v2174_v30, %v928_v39  ;;  %2526 = vmatprep.mubr.f32.mxu0 %v997_v35  ;;  %v1394_v35 = vld [vmem:[#allocation11 + $0x68] sm:$0xff]  ;;  %v1393_v39 = vld [vmem:[#allocation11 + $0x60] sm:$0xff] }
 0x2d3   : > { %v1000_v41 = vmax.f32 %v934_v38, 0.0  ;;  %2527 = vmatmul.mubr.f32.vlgmr.msra.gmra.mrb[16].mxu0 %v998_v37  ;;  %v2856_v37 = vpack.c.bf16 %v1391_v34, %v1389_v33  ;;  %v2858_v38 = vpack.c.bf16 %v1396_v36, %v1394_v35 }
 0x2d4   : > { %v999_v42 = vmax.f32 %v929_v40, 0.0  ;;  %v2478_v43 = vpop.f32.mrb[4].mxu1  ;;  %2849 = vmatpush1.bf16.msra.mxu0 %v2848_v25  ;;  %v1395_v40 = vld [vmem:[#allocation11 + $0x70] sm:$0xff] }
 0x2d5   : > { %v944_v44 = vadd.f32 %v2478_v43, %v2174_v30  ;;  %v938_v45 = vpop.f32.mrb[5].mxu1  ;;  %2851 = vmatprep.subr.bf16.mxu0 %v2850_v26  ;;  %v2860_v43 = vpack.c.bf16 %v1395_v40, %v1393_v39 }
 0x2d6   : > { %v939_v46 = vadd.f32 %v2174_v30, %v938_v45  ;;  %2529 = vmatprep.mubr.f32.mxu0 %v999_v42  ;;  %v1400_v42 = vld [vmem:[#allocation11 + $0x98] sm:$0xff]  ;;  %v1397_v45 = vld [vmem:[#allocation11 + $0x80] sm:$0xff] }
 0x2d7   : > { %v1002_v47 = vmax.f32 %v944_v44, 0.0  ;;  %2530 = vmatmul.mubr.f32.gmra.mrb[18].mxu0 %v1000_v41  ;;  %v1398_v41 = vld [vmem:[#allocation11 + $0x88] sm:$0xff] }
 0x2d8   : > { %v1001_v48 = vmax.f32 %v939_v46, 0.0  ;;  %v2481_v49 = vpop.f32.mrb[6].mxu1  ;;  %2853 = vmatpush1.bf16.msra.mxu0 %v2852_v31  ;;  %v2862_v44 = vpack.c.bf16 %v1400_v42, %v1398_v41  ;;  %v1399_v46 = vld [vmem:[#allocation11 + $0x90] sm:$0xff] }
 0x2d9   : > { %v954_v50 = vadd.f32 %v2481_v49, %v2174_v30  ;;  %v948_v51 = vpop.f32.mrb[7].mxu1  ;;  %v2864_v49 = vpack.c.bf16 %v1399_v46, %v1397_v45  ;;  %v1410_v45 = vld [vmem:[#allocation11 + $0xe8] sm:$0xff]  ;;  %v1412_v46 = vld [vmem:[#allocation11 + $0xf8] sm:$0xff] }
 0x2da   : > { %2532 = vmatprep.mubr.f32.mxu0 %v1001_v48  ;;  %v949_v52 = vadd.f32 %v2174_v30, %v948_v51  ;;  %v1404_v48 = vld [vmem:[#allocation11 + $0xb8] sm:$0xff]  ;;  %v1401_v51 = vld [vmem:[#allocation11 + $0xa0] sm:$0xff] }
 0x2db   : > { %2533 = vmatmul.mubr.f32.gmra.mrb[20].mxu0 %v1002_v47  ;;  %v1004_v53 = vmax.f32 %v954_v50, 0.0  ;;  %v1402_v47 = vld [vmem:[#allocation11 + $0xa8] sm:$0xff] }
 0x2dc   : > { %v1003_v54 = vmax.f32 %v949_v52, 0.0  ;;  %v2484_v55 = vpop.f32.mrb[8].mxu1  ;;  %v2866_v50 = vpack.c.bf16 %v1404_v48, %v1402_v47  ;;  %v1403_v52 = vld [vmem:[#allocation11 + $0xb0] sm:$0xff]  ;;  %v2874_v47 = vpack.c.bf16 %v1412_v46, %v1410_v45  ;;  %v1409_v48 = vld [vmem:[#allocation11 + $0xe0] sm:$0xff] }
 0x2dd   : > { %v964_v56 = vadd.f32 %v2484_v55, %v2174_v30  ;;  %v958_v57 = vpop.f32.mrb[9].mxu1  ;;  %v2868_v55 = vpack.c.bf16 %v1403_v52, %v1401_v51  ;;  %v3425_v51 = vmov 0.0   ;;  %v1574_v52 = vld [vmem:[#allocation13] sm:$0xff] }
 0x2de   : > { %2535 = vmatprep.mubr.f32.mxu0 %v1003_v54  ;;  %v959_v58 = vadd.f32 %v2174_v30, %v958_v57  ;;  %v1408_v54 = vld [vmem:[#allocation11 + $0xd8] sm:$0xff]  ;;  %v1405_v57 = vld [vmem:[#allocation11 + $0xc0] sm:$0xff] }
 0x2df   : > { %2536 = vmatmul.mubr.f32.gmra.mrb[22].mxu0 %v1004_v53  ;;  %v1006_v59 = vmax.f32 %v964_v56, 0.0  ;;  %v1406_v53 = vld [vmem:[#allocation11 + $0xc8] sm:$0xff] }
 0x2e0   : > { %v1005_v60 = vmax.f32 %v959_v58, 0.0  ;;  %v2487_v61 = vpop.f32.mrb[10].mxu1  ;;  %v2870_v56 = vpack.c.bf16 %v1408_v54, %v1406_v53  ;;  %v1407_v58 = vld [vmem:[#allocation11 + $0xd0] sm:$0xff]  ;;  %v1575_v53 = vld [vmem:[#allocation13 + $0x8] sm:$0xff] }
 0x2e1   : > { %v974_v62 = vadd.f32 %v2487_v61, %v2174_v30  ;;  %v968_v63 = vpop.f32.mrb[11].mxu1  ;;  %v1576_v54 = vld [vmem:[#allocation13 + $0x10] sm:$0xff] }
 0x2e2   : > { %2538 = vmatprep.mubr.f32.mxu0 %v1005_v60  ;;  %v969_v0 = vadd.f32 %v2174_v30, %v968_v63  ;;  %v2175_v60 = vld [vmem:[%s4109_s5] ss:$0 sm:$0xff]  ;;  %s3925_s5 = scalar_lea.hbm %s4112_s22, %s2188_s14 }
 0x2e3   : > { %2539 = vmatmul.mubr.f32.gmra.mrb[24].mxu0 %v1006_v59  ;;  %v1008_v1 = vmax.f32 %v974_v62, 0.0  ;;  %v2872_v59 = vpack.c.bf16 %v1407_v58, %v1405_v57  ;;  %v1578_v58 = vld [vmem:[#allocation13 + $0x20] sm:$0xff] }
 0x2e4   : > { %v1007_v2 = vmax.f32 %v969_v0, 0.0  ;;  %v2490_v3 = vpop.f32.mrb[12].mxu1 }
 0x2e5   : > { %v984_v4 = vadd.f32 %v2490_v3, %v2174_v30  ;;  %v978_v5 = vpop.f32.mrb[13].mxu1 }
 0x2e6   : > { %2541 = vmatprep.mubr.f32.mxu0 %v1007_v2  ;;  %v979_v6 = vadd.f32 %v2174_v30, %v978_v5 }
 0x2e7   : > { %2542 = vmatmul.mubr.f32.gmra.mrb[26].mxu0 %v1008_v1  ;;  %v1010_v7 = vmax.f32 %v984_v4, 0.0 }
 0x2e8   : > { %v1009_v8 = vmax.f32 %v979_v6, 0.0  ;;  %v2493_v9 = vpop.f32.mrb[14].mxu1 }
 0x2e9   : > { %v994_v10 = vadd.f32 %v2493_v9, %v2174_v30  ;;  %v988_v11 = vpop.f32.mrb[15].mxu1 }
 0x2ea   : > { %2544 = vmatprep.mubr.f32.mxu0 %v1009_v8  ;;  %v989_v12 = vadd.f32 %v2174_v30, %v988_v11  ;;  %v1392_v30 = vld [vmem:[#allocation11 + $0x58] sm:$0xff] }
 0x2eb   : > { %2545 = vmatmul.mubr.f32.gmra.mrb[28].mxu0 %v1010_v7  ;;  %v1012_v13 = vmax.f32 %v994_v10, 0.0  ;;  %v2854_v32 = vpack.c.bf16 %v1392_v30, %v1390_v29 }
 0x2ec   : > { %v1011_v14 = vmax.f32 %v989_v12, 0.0 }
 0x2ed   : > { %2855 = vmatprep.subr.bf16.mxu0 %v2854_v32 }
 0x2ee   : > { %2547 = vmatprep.mubr.f32.mxu0 %v1011_v14  ;;  %2857 = vmatpush1.bf16.msra.mxu0 %v2856_v37 }
 0x2ef   : > { %2548 = vmatmul.mubr.f32.gmra.mrb[30].mxu0 %v1012_v13  ;;  %2859 = vmatprep.subr.bf16.mxu0 %v2858_v38 }
 0x2f0   : > { %1477 = vmatprep.mubr.f32.mxu0 %v3425_v51 }
 0x2f2   : > { %2861 = vmatpush1.bf16.msra.mxu0 %v2860_v43 }
 0x2f3   : > { %2863 = vmatprep.subr.bf16.mxu0 %v2862_v44 }
 0x2f6   : > { %2865 = vmatpush1.bf16.msra.mxu0 %v2864_v49  ;;  %v1411_v49 = vld [vmem:[#allocation11 + $0xf0] sm:$0xff] }
 0x2f7   : > { %2867 = vmatprep.subr.bf16.mxu0 %v2866_v50  ;;  %v2876_v50 = vpack.c.bf16 %v1411_v49, %v1409_v48 }
 0x2fa   : > { %2869 = vmatpush1.bf16.msra.mxu0 %v2868_v55  ;;  %v2878_v55 = vpack.c.bf16 %v1575_v53, %v1574_v52 }
 0x2fb   : > { %2871 = vmatprep.subr.bf16.mxu0 %v2870_v56  ;;  %v1577_v56 = vld [vmem:[#allocation13 + $0x18] sm:$0xff] }
 0x2fc   : > { %v2882_v57 = vpack.c.bf16 %v1577_v56, %v1576_v54  ;;  %2879 = vmatprep.subr.bf16.mxu1 %v2878_v55 }
 0x2fe   : > { %2873 = vmatpush1.bf16.msra.mxu0 %v2872_v59  ;;  %v1579_v59 = vld [vmem:[#allocation13 + $0x28] sm:$0xff] }
 0x2ff   : > { %2875 = vmatprep.subr.bf16.mxu0 %v2874_v47 }
 0x302   : > { %2877 = vmatpush1.bf16.msra.mxu0 %v2876_v50 }
 0x3a6   : > { %v2528_v61 = vpop.f32.mrb[16].mxu0 }
 0x3a7   : > { %v1108_v62 = vadd.f32 %v2528_v61, %v2175_v60  ;;  %v1102_v63 = vpop.f32.mrb[17].mxu0  ;;  %v1580_v61 = vld [vmem:[#allocation13 + $0x30] sm:$0xff] }
 0x3a8   : > { %v1103_v0 = vadd.f32 %v2175_v60, %v1102_v63 }
 0x3a9   : > { %v1182_v3 = vmax.f32 %v1108_v62, 0.0  ;;  %v1581_v62 = vld [vmem:[#allocation13 + $0x38] sm:$0xff] }
 0x3aa   : > { %v1181_v1 = vmax.f32 %v1103_v0, 0.0  ;;  %v2531_v2 = vpop.f32.mrb[18].mxu0  ;;  %v2890_v63 = vpack.c.bf16 %v1581_v62, %v1580_v61  ;;  %v1582_v0 = vld [vmem:[#allocation13 + $0x40] sm:$0xff] }
 0x3ab   : > { %v1118_v4 = vadd.f32 %v2531_v2, %v2175_v60  ;;  %v1112_v5 = vpop.f32.mrb[19].mxu0  ;;  %v1758_v62 = vld [vmem:[#allocation14] sm:$0xff] }
 0x3ac   : > { %v1113_v6 = vadd.f32 %v2175_v60, %v1112_v5  ;;  %2582 = vmatprep.mubr.f32.mxu1 %v1181_v1  ;;  %v1583_v1 = vld [vmem:[#allocation13 + $0x48] sm:$0xff] }
 0x3ad   : > { %2583 = vmatmul.mubr.f32.vlgmr.msra.gmra.mrb[16].mxu1 %v1182_v3  ;;  %v1184_v9 = vmax.f32 %v1118_v4, 0.0  ;;  %v2894_v2 = vpack.c.bf16 %v1583_v1, %v1582_v0  ;;  %v1584_v3 = vld [vmem:[#allocation13 + $0x50] sm:$0xff]  ;;  %v1585_v4 = vld [vmem:[#allocation13 + $0x58] sm:$0xff] }
 0x3ae   : > { %v1183_v7 = vmax.f32 %v1113_v6, 0.0  ;;  %v2534_v8 = vpop.f32.mrb[20].mxu0  ;;  %2881 = vmatpush3.bf16.msra.mxu1 %v2878_v55  ;;  %v2898_v5 = vpack.c.bf16 %v1585_v4, %v1584_v3  ;;  %v1586_v6 = vld [vmem:[#allocation13 + $0x60] sm:$0xff]  ;;  %v1761_v3 = vld [vmem:[#allocation14 + $0x18] sm:$0xff] }
 0x3af   : > { %v1128_v10 = vadd.f32 %v2534_v8, %v2175_v60  ;;  %v1122_v11 = vpop.f32.mrb[21].mxu0  ;;  %2883 = vmatprep.subr.bf16.mxu1 %v2882_v57 }
 0x3b0   : > { %v1123_v12 = vadd.f32 %v2175_v60, %v1122_v11  ;;  %2585 = vmatprep.mubr.f32.mxu1 %v1183_v7  ;;  %v1587_v7 = vld [vmem:[#allocation13 + $0x68] sm:$0xff] }
 0x3b1   : > { %v1186_v13 = vmax.f32 %v1128_v10, 0.0  ;;  %2586 = vmatmul.mubr.f32.gmra.mrb[18].mxu1 %v1184_v9  ;;  %v2902_v8 = vpack.c.bf16 %v1587_v7, %v1586_v6  ;;  %v3856_v9 = vld [vmem:[%s4110_s17] ss:$0 sm:$0xff]  ;;  %v1763_v7 = vld [vmem:[#allocation14 + $0x28] sm:$0xff]  ;;  %s4113_s17 = sld [smem:[#allocation32_spill]] }
 0x3b2   : > { %v1185_v14 = vmax.f32 %v1123_v12, 0.0  ;;  %v2537_v15 = vpop.f32.mrb[22].mxu0  ;;  %2885 = vmatpush3.bf16.msra.mxu1 %v2882_v57 }
 0x3b3   : > { %v1138_v16 = vadd.f32 %v2537_v15, %v2175_v60  ;;  %v1132_v17 = vpop.f32.mrb[23].mxu0 }
 0x3b4   : > { %2588 = vmatprep.mubr.f32.mxu1 %v1185_v14  ;;  %v1133_v18 = vadd.f32 %v2175_v60, %v1132_v17 }
 0x3b5   : > { %2589 = vmatmul.mubr.f32.gmra.mrb[20].mxu1 %v1186_v13  ;;  %v1188_v19 = vmax.f32 %v1138_v16, 0.0 }
 0x3b6   : > { %v1187_v20 = vmax.f32 %v1133_v18, 0.0  ;;  %v2540_v21 = vpop.f32.mrb[24].mxu0 }
 0x3b7   : > { %v1148_v22 = vadd.f32 %v2540_v21, %v2175_v60  ;;  %v1142_v23 = vpop.f32.mrb[25].mxu0 }
 0x3b8   : > { %2591 = vmatprep.mubr.f32.mxu1 %v1187_v20  ;;  %v1143_v24 = vadd.f32 %v2175_v60, %v1142_v23 }
 0x3b9   : > { %2592 = vmatmul.mubr.f32.gmra.mrb[22].mxu1 %v1188_v19  ;;  %v1190_v25 = vmax.f32 %v1148_v22, 0.0 }
 0x3ba   : > { %v1189_v26 = vmax.f32 %v1143_v24, 0.0  ;;  %v2543_v27 = vpop.f32.mrb[26].mxu0 }
 0x3bb   : > { %v1158_v28 = vadd.f32 %v2543_v27, %v2175_v60  ;;  %v1152_v29 = vpop.f32.mrb[27].mxu0 }
 0x3bc   : > { %2594 = vmatprep.mubr.f32.mxu1 %v1189_v26  ;;  %v1153_v30 = vadd.f32 %v2175_v60, %v1152_v29 }
 0x3bd   : > { %2595 = vmatmul.mubr.f32.gmra.mrb[24].mxu1 %v1190_v25  ;;  %v1192_v31 = vmax.f32 %v1158_v28, 0.0 }
 0x3be   : > { %v1191_v32 = vmax.f32 %v1153_v30, 0.0  ;;  %v2546_v33 = vpop.f32.mrb[28].mxu0 }
 0x3bf   : > { %v1168_v34 = vadd.f32 %v2546_v33, %v2175_v60  ;;  %v1162_v35 = vpop.f32.mrb[29].mxu0 }
 0x3c0   : > { %2597 = vmatprep.mubr.f32.mxu1 %v1191_v32  ;;  %v1163_v36 = vadd.f32 %v2175_v60, %v1162_v35 }
 0x3c1   : > { %2598 = vmatmul.mubr.f32.gmra.mrb[26].mxu1 %v1192_v31  ;;  %v1194_v37 = vmax.f32 %v1168_v34, 0.0 }
 0x3c2   : > { %v1193_v38 = vmax.f32 %v1163_v36, 0.0  ;;  %v2549_v39 = vpop.f32.mrb[30].mxu0 }
 0x3c3   : > { %v1178_v40 = vadd.f32 %v2549_v39, %v2175_v60  ;;  %v1172_v41 = vpop.f32.mrb[31].mxu0 }
 0x3c4   : > { %2600 = vmatprep.mubr.f32.mxu1 %v1193_v38  ;;  %v1173_v42 = vadd.f32 %v2175_v60, %v1172_v41  ;;  %v2886_v60 = vpack.c.bf16 %v1579_v59, %v1578_v58  ;;  %v1588_v59 = vld [vmem:[#allocation13 + $0x70] sm:$0xff] }
 0x3c5   : > { %2601 = vmatmul.mubr.f32.gmra.mrb[28].mxu1 %v1194_v37  ;;  %v1196_v43 = vmax.f32 %v1178_v40, 0.0 }
 0x3c6   : > { %v1195_v44 = vmax.f32 %v1173_v42, 0.0  ;;  %2887 = vmatprep.subr.bf16.mxu1 %v2886_v60 }
 0x3c7   : > { %2889 = vmatpush3.bf16.msra.mxu1 %v2886_v60  ;;  %v1589_v60 = vld [vmem:[#allocation13 + $0x78] sm:$0xff] }
 0x3c8   : > { %2603 = vmatprep.mubr.f32.mxu1 %v1195_v44  ;;  %2891 = vmatprep.subr.bf16.mxu1 %v2890_v63  ;;  %v2906_v61 = vpack.c.bf16 %v1589_v60, %v1588_v59 }
 0x3c9   : > { %2604 = vmatmul.mubr.f32.gmra.mrb[30].mxu1 %v1196_v43 }
 0x3cb   : > { %2893 = vmatpush3.bf16.msra.mxu1 %v2890_v63  ;;  %v1759_v63 = vld [vmem:[#allocation14 + $0x8] sm:$0xff] }
 0x3cc   : > { %2895 = vmatprep.subr.bf16.mxu1 %v2894_v2  ;;  %v2910_v0 = vpack.c.bf16 %v1759_v63, %v1758_v62 }
 0x3cf   : > { %2897 = vmatpush3.bf16.msra.mxu1 %v2894_v2  ;;  %v1760_v2 = vld [vmem:[#allocation14 + $0x10] sm:$0xff] }
 0x3d0   : > { %2899 = vmatprep.subr.bf16.mxu1 %v2898_v5 }
 0x3d3   : > { %2901 = vmatpush3.bf16.msra.mxu1 %v2898_v5  ;;  %v2914_v5 = vpack.c.bf16 %v1761_v3, %v1760_v2 }
 0x3d4   : > { %2903 = vmatprep.subr.bf16.mxu1 %v2902_v8 }
 0x3d7   : > { %2905 = vmatpush3.bf16.msra.mxu1 %v2902_v8 }
 0x3d8   : > { %2907 = vmatprep.subr.bf16.mxu1 %v2906_v61 }
 0x3db   : > { %2909 = vmatpush3.bf16.msra.mxu1 %v2906_v61 }
 0x3dc   : > { %2911 = vmatprep.subr.bf16.mxu1 %v2910_v0 }
 0x480   : > { %v2584_v10 = vpop.f32.mrb[16].mxu1 }
 0x481   : > { %v1286_v11 = vpop.f32.mrb[17].mxu1  ;;  %v1292_v13 = vadd.f32 %v2584_v10, %v3856_v9 }
 0x482   : > { %v1287_v12 = vadd.f32 %v3856_v9, %v1286_v11  ;;  %v1764_v11 = vld [vmem:[#allocation14 + $0x30] sm:$0xff] }
 0x483   : > { %v1366_v17 = vmax.f32 %v1292_v13, 0.0 }
 0x484   : > { %v1365_v14 = vmax.f32 %v1287_v12, 0.0  ;;  %v2587_v15 = vpop.f32.mrb[18].mxu1  ;;  %v1765_v12 = vld [vmem:[#allocation14 + $0x38] sm:$0xff] }
 0x485   : > { %v1296_v16 = vpop.f32.mrb[19].mxu1  ;;  %v1302_v21 = vadd.f32 %v2587_v15, %v3856_v9 }
 0x486   : > { %1478 = vmatmul.mubr.f32.vlgmr.msra.gmra.mrb[32].mxu0 %v1365_v14  ;;  %v1297_v18 = vadd.f32 %v3856_v9, %v1296_v16  ;;  %v2922_v14 = vpack.c.bf16 %v1765_v12, %v1764_v11  ;;  %v1766_v16 = vld [vmem:[#allocation14 + $0x40] sm:$0xff] }
 0x487   : > { %1483 = vmatprep.mubr.f32.mxu0 %v3425_v51  ;;  %v1368_v25 = vmax.f32 %v1302_v21, 0.0  ;;  %v1768_v21 = vld [vmem:[#allocation14 + $0x50] sm:$0xff] }
 0x488   : > { %v2590_v19 = vpop.f32.mrb[20].mxu1  ;;  %v1367_v22 = vmax.f32 %v1297_v18, 0.0 }
 0x489   : > { %v1306_v20 = vpop.f32.mrb[21].mxu1  ;;  %v1312_v29 = vadd.f32 %v2590_v19, %v3856_v9 }
 0x48a   : > { %1484 = vmatmul.mubr.f32.gmra.mrb[34].mxu0 %v1366_v17  ;;  %v1307_v26 = vadd.f32 %v3856_v9, %v1306_v20  ;;  %v1767_v17 = vld [vmem:[#allocation14 + $0x48] sm:$0xff] }
 0x48b   : > { %1489 = vmatprep.mubr.f32.mxu0 %v3425_v51  ;;  %v1370_v33 = vmax.f32 %v1312_v29, 0.0  ;;  %v2926_v19 = vpack.c.bf16 %v1767_v17, %v1766_v16 }
 0x48c   : > { %v2593_v23 = vpop.f32.mrb[22].mxu1  ;;  %v1369_v30 = vmax.f32 %v1307_v26, 0.0  ;;  %v1770_v26 = vld [vmem:[#allocation14 + $0x60] sm:$0xff] }
 0x48d   : > { %v1316_v24 = vpop.f32.mrb[23].mxu1  ;;  %v1322_v37 = vadd.f32 %v2593_v23, %v3856_v9 }
 0x48e   : > { %1490 = vmatmul.mubr.f32.gmra.mrb[36].mxu0 %v1367_v22  ;;  %v1317_v34 = vadd.f32 %v3856_v9, %v1316_v24  ;;  %v1769_v22 = vld [vmem:[#allocation14 + $0x58] sm:$0xff] }
 0x48f   : > { %1495 = vmatprep.mubr.f32.mxu0 %v3425_v51  ;;  %v1372_v41 = vmax.f32 %v1322_v37, 0.0  ;;  %v2930_v24 = vpack.c.bf16 %v1769_v22, %v1768_v21  ;;  %v3932_v22 = vld [vmem:[%s4113_s17] ss:$0 sm:$0xff] }
 0x490   : > { %v2596_v27 = vpop.f32.mrb[24].mxu1  ;;  %v1371_v38 = vmax.f32 %v1317_v34, 0.0 }
 0x491   : > { %v1326_v28 = vpop.f32.mrb[25].mxu1  ;;  %v1332_v43 = vadd.f32 %v2596_v27, %v3856_v9  ;;  %v1771_v27 = vld [vmem:[#allocation14 + $0x68] sm:$0xff] }
 0x492   : > { %1496 = vmatmul.mubr.f32.gmra.mrb[38].mxu0 %v1368_v25  ;;  %v1327_v42 = vadd.f32 %v3856_v9, %v1326_v28  ;;  %v2934_v29 = vpack.c.bf16 %v1771_v27, %v1770_v26 }
 0x493   : > { %1501 = vmatprep.mubr.f32.mxu0 %v3425_v51  ;;  %v1374_v45 = vmax.f32 %v1332_v43, 0.0 }
 0x494   : > { %v2599_v31 = vpop.f32.mrb[26].mxu1  ;;  %v1373_v44 = vmax.f32 %v1327_v42, 0.0 }
 0x495   : > { %v1336_v32 = vpop.f32.mrb[27].mxu1  ;;  %v1342_v47 = vadd.f32 %v2599_v31, %v3856_v9  ;;  %v1772_v31 = vld [vmem:[#allocation14 + $0x70] sm:$0xff] }
 0x496   : > { %1502 = vmatmul.mubr.f32.gmra.mrb[40].mxu0 %v1369_v30  ;;  %v1337_v46 = vadd.f32 %v3856_v9, %v1336_v32  ;;  %v1773_v32 = vld [vmem:[#allocation14 + $0x78] sm:$0xff] }
 0x497   : > { %1507 = vmatprep.mubr.f32.mxu0 %v3425_v51  ;;  %v1376_v49 = vmax.f32 %v1342_v47, 0.0  ;;  %v2938_v34 = vpack.c.bf16 %v1773_v32, %v1772_v31 }
 0x498   : > { %v2602_v35 = vpop.f32.mrb[28].mxu1  ;;  %v1375_v48 = vmax.f32 %v1337_v46, 0.0 }
 0x499   : > { %v1346_v36 = vpop.f32.mrb[29].mxu1  ;;  %v1352_v52 = vadd.f32 %v2602_v35, %v3856_v9 }
 0x49a   : > { %1508 = vmatmul.mubr.f32.gmra.mrb[42].mxu0 %v1370_v33  ;;  %v1347_v50 = vadd.f32 %v3856_v9, %v1346_v36 }
 0x49b   : > { %1513 = vmatprep.mubr.f32.mxu0 %v3425_v51  ;;  %v1378_v54 = vmax.f32 %v1352_v52, 0.0 }
 0x49c   : > { %v2605_v39 = vpop.f32.mrb[30].mxu1  ;;  %v1377_v53 = vmax.f32 %v1347_v50, 0.0 }
 0x49d   : > { %v1356_v40 = vpop.f32.mrb[31].mxu1  ;;  %v1362_v56 = vadd.f32 %v2605_v39, %v3856_v9 }
 0x49e   : > { %1514 = vmatmul.mubr.f32.gmra.mrb[44].mxu0 %v1371_v38  ;;  %v1357_v55 = vadd.f32 %v3856_v9, %v1356_v40 }
 0x49f   : > { %1519 = vmatprep.mubr.f32.mxu0 %v3425_v51  ;;  %v1380_v58 = vmax.f32 %v1362_v56, 0.0 }
 0x4a0   : > { %v1379_v57 = vmax.f32 %v1357_v55, 0.0 }
 0x4a2   : > { %1520 = vmatmul.mubr.f32.gmra.mrb[46].mxu0 %v1372_v41 }
 0x4a3   : > { %1525 = vmatprep.mubr.f32.mxu0 %v3425_v51 }
 0x4a6   : > { %1526 = vmatmul.mubr.f32.gmra.mrb[48].mxu0 %v1373_v44 }
 0x4a7   : > { %1531 = vmatprep.mubr.f32.mxu0 %v3425_v51 }
 0x4aa   : > { %1532 = vmatmul.mubr.f32.gmra.mrb[50].mxu0 %v1374_v45 }
 0x4ab   : > { %1537 = vmatprep.mubr.f32.mxu0 %v3425_v51 }
 0x4ae   : > { %1538 = vmatmul.mubr.f32.gmra.mrb[52].mxu0 %v1375_v48 }
 0x4af   : > { %1543 = vmatprep.mubr.f32.mxu0 %v3425_v51 }
 0x4b2   : > { %1544 = vmatmul.mubr.f32.gmra.mrb[54].mxu0 %v1376_v49 }
 0x4b3   : > { %1549 = vmatprep.mubr.f32.mxu0 %v3425_v51 }
 0x4b6   : > { %1550 = vmatmul.mubr.f32.gmra.mrb[56].mxu0 %v1377_v53 }
 0x4b7   : > { %1555 = vmatprep.mubr.f32.mxu0 %v3425_v51 }
 0x4ba   : > { %1556 = vmatmul.mubr.f32.gmra.mrb[58].mxu0 %v1378_v54  ;;  %v2177_v54 = vld [vmem:[%s4111_s25] ss:$0 sm:$0xff]  ;;  %s3426_s25 = smov [#allocation16]  }
 0x4bb   : > { %1561 = vmatprep.mubr.f32.mxu0 %v3425_v51  ;;  %s3301_s29 = sshll.u32 %s3426_s25, 4  ;;  %s3302_s29 = int_to_ptr.vmem [resolvable:$false] %s3301_s29 }
 0x4bc   : > { %s3303_s13 = scalar_lea.vmem %s3302_s29, 4096  ;;  %p3304_p2 = scmp.lt.s32.totalorder %s3927_s30, %s3302_s29 }
 0x4bd   : > { %p3305_p8 = scmp.lt.s32.totalorder %s3303_s13, %s3297_s1 }
 0x4be   : > { %1562 = vmatmul.mubr.f32.gmra.mrb[60].mxu0 %v1379_v57 }
 0x4bf   : > { %1567 = vmatprep.mubr.f32.mxu0 %v3425_v51  ;;  %v1762_v51 = vld [vmem:[#allocation14 + $0x20] sm:$0xff]  ;;  %p3306_p6 = por %p3305_p8, %p3304_p2 }
 0x4c0   : > { %v2918_v9 = vpack.c.bf16 %v1763_v7, %v1762_v51 }
 0x4c1   : > { %p3307_p10 = pnand %p3306_p6, %p3300_p0 }
 0x4c2   : > { %1568 = vmatmul.mubr.f32.gmra.mrb[62].mxu0 %v1380_v58 }
 0x559   : > { %v1479_v1 = vpop.f32.mrb[32].mxu0 }
 0x55a   : > { %v3889_v4 = vpop.f32.mrb[33].mxu0  ;;  %2638 = vmatprep.mubr.f32.mxu1 %v1479_v1 }
 0x55d   : > { %v1485_v6 = vpop.f32.mrb[34].mxu0 }
 0x55e   : > { %v3891_v8 = vpop.f32.mrb[35].mxu0  ;;  %2639 = vmatmul.mubr.f32.vlgmr.msra.gmra.mrb[32].mxu1 %v1485_v6 }
 0x55f   : > { %2913 = vmatpush3.bf16.msra.mxu1 %v2910_v0 }
 0x560   : > { %2915 = vmatprep.subr.bf16.mxu1 %v2914_v5 }
 0x561   : > { %v1491_v10 = vpop.f32.mrb[36].mxu0 }
 0x562   : > { %v3893_v13 = vpop.f32.mrb[37].mxu0  ;;  %2641 = vmatprep.mubr.f32.mxu1 %v1491_v10 }
 0x563   : > { %2917 = vmatpush3.bf16.msra.mxu1 %v2914_v5 }
 0x564   : > { %2919 = vmatprep.subr.bf16.mxu1 %v2918_v9 }
 0x565   : > { %v1497_v15 = vpop.f32.mrb[38].mxu0 }
 0x566   : > { %v1499_v18 = vpop.f32.mrb[39].mxu0  ;;  %2642 = vmatmul.mubr.f32.gmra.mrb[34].mxu1 %v1497_v15 }
 0x567   : > { %2921 = vmatpush3.bf16.msra.mxu1 %v2918_v9 }
 0x568   : > { %2923 = vmatprep.subr.bf16.mxu1 %v2922_v14 }
 0x569   : > { %v1503_v20 = vpop.f32.mrb[40].mxu0 }
 0x56a   : > { %v1505_v23 = vpop.f32.mrb[41].mxu0  ;;  %2644 = vmatprep.mubr.f32.mxu1 %v1503_v20 }
 0x56b   : > { %2925 = vmatpush3.bf16.msra.mxu1 %v2922_v14 }
 0x56c   : > { %2927 = vmatprep.subr.bf16.mxu1 %v2926_v19 }
 0x56d   : > { %v1509_v25 = vpop.f32.mrb[42].mxu0 }
 0x56e   : > { %v1511_v28 = vpop.f32.mrb[43].mxu0  ;;  %2645 = vmatmul.mubr.f32.gmra.mrb[36].mxu1 %v1509_v25 }
 0x56f   : > { %2929 = vmatpush3.bf16.msra.mxu1 %v2926_v19 }
 0x570   : > { %2931 = vmatprep.subr.bf16.mxu1 %v2930_v24 }
 0x571   : > { %v1515_v30 = vpop.f32.mrb[44].mxu0 }
 0x572   : > { %v1517_v33 = vpop.f32.mrb[45].mxu0  ;;  %2647 = vmatprep.mubr.f32.mxu1 %v1515_v30 }
 0x573   : > { %2933 = vmatpush3.bf16.msra.mxu1 %v2930_v24 }
 0x574   : > { %2935 = vmatprep.subr.bf16.mxu1 %v2934_v29 }
 0x575   : > { %v1521_v35 = vpop.f32.mrb[46].mxu0 }
 0x576   : > { %v1523_v36 = vpop.f32.mrb[47].mxu0  ;;  %2648 = vmatmul.mubr.f32.gmra.mrb[38].mxu1 %v1521_v35 }
 0x577   : > { %2937 = vmatpush3.bf16.msra.mxu1 %v2934_v29 }
 0x578   : > { %2939 = vmatprep.subr.bf16.mxu1 %v2938_v34 }
 0x579   : > { %v1527_v37 = vpop.f32.mrb[48].mxu0 }
 0x57a   : > { %v1529_v38 = vpop.f32.mrb[49].mxu0  ;;  %2650 = vmatprep.mubr.f32.mxu1 %v1527_v37 }
 0x57b   : > { %2941 = vmatpush3.bf16.msra.mxu1 %v2938_v34 }
 0x57d   : > { %v1533_v39 = vpop.f32.mrb[50].mxu0 }
 0x57e   : > { %v1535_v40 = vpop.f32.mrb[51].mxu0  ;;  %2651 = vmatmul.mubr.f32.gmra.mrb[40].mxu1 %v1533_v39 }
 0x581   : > { %v1539_v41 = vpop.f32.mrb[52].mxu0 }
 0x582   : > { %v1541_v42 = vpop.f32.mrb[53].mxu0  ;;  %2653 = vmatprep.mubr.f32.mxu1 %v1539_v41 }
 0x585   : > { %v1545_v43 = vpop.f32.mrb[54].mxu0 }
 0x586   : > { %v1547_v44 = vpop.f32.mrb[55].mxu0  ;;  %2654 = vmatmul.mubr.f32.gmra.mrb[42].mxu1 %v1545_v43 }
 0x589   : > { %v1551_v45 = vpop.f32.mrb[56].mxu0 }
 0x58a   : > { %v1553_v46 = vpop.f32.mrb[57].mxu0  ;;  %2656 = vmatprep.mubr.f32.mxu1 %v1551_v45 }
 0x58d   : > { %v1557_v47 = vpop.f32.mrb[58].mxu0 }
 0x58e   : > { %v1559_v48 = vpop.f32.mrb[59].mxu0  ;;  %2657 = vmatmul.mubr.f32.gmra.mrb[44].mxu1 %v1557_v47 }
 0x591   : > { %v1563_v49 = vpop.f32.mrb[60].mxu0 }
 0x592   : > { %v1565_v50 = vpop.f32.mrb[61].mxu0  ;;  %2659 = vmatprep.mubr.f32.mxu1 %v1563_v49 }
 0x595   : > { %v1569_v52 = vpop.f32.mrb[62].mxu0 }
 0x596   : > { %v1571_v53 = vpop.f32.mrb[63].mxu0  ;;  %2660 = vmatmul.mubr.f32.gmra.mrb[46].mxu1 %v1569_v52 }
 0x597   : > { %2694 = vmatprep.mubr.f32.mxu1 %v3889_v4 }
 0x59a   : > { %2695 = vmatmul.mubr.f32.vlgmr.msra.gmra.mrb[48].mxu1 %v3891_v8 }
 0x59b   : > { %2697 = vmatprep.mubr.f32.mxu1 %v3893_v13 }
 0x59e   : > { %2698 = vmatmul.mubr.f32.gmra.mrb[50].mxu1 %v1499_v18 }
 0x59f   : > { %2700 = vmatprep.mubr.f32.mxu1 %v1505_v23 }
 0x5a2   : > { %2701 = vmatmul.mubr.f32.gmra.mrb[52].mxu1 %v1511_v28 }
 0x5a3   : > { %2703 = vmatprep.mubr.f32.mxu1 %v1517_v33 }
 0x5a6   : > { %2704 = vmatmul.mubr.f32.gmra.mrb[54].mxu1 %v1523_v36 }
 0x5a7   : > { %2706 = vmatprep.mubr.f32.mxu1 %v1529_v38 }
 0x5aa   : > { %2707 = vmatmul.mubr.f32.gmra.mrb[56].mxu1 %v1535_v40 }
 0x5ab   : > { %2709 = vmatprep.mubr.f32.mxu1 %v1541_v42 }
 0x5ae   : > { %2710 = vmatmul.mubr.f32.gmra.mrb[58].mxu1 %v1547_v44 }
 0x5af   : > { %2712 = vmatprep.mubr.f32.mxu1 %v1553_v46 }
 0x5b2   : > { %2713 = vmatmul.mubr.f32.gmra.mrb[60].mxu1 %v1559_v48 }
 0x5b3   : > { %2715 = vmatprep.mubr.f32.mxu1 %v1565_v50 }
 0x5b6   : > { %2716 = vmatmul.mubr.f32.gmra.mrb[62].mxu1 %v1571_v53 }
 0x631   : > { %v2640_v55 = vpop.f32.mrb[32].mxu1 }
 0x632   : > { %v1669_v56 = vadd.f32 %v2640_v55, %v2177_v54  ;;  %v1663_v57 = vpop.f32.mrb[33].mxu1 }
 0x633   : > { %v1664_v58 = vadd.f32 %v2177_v54, %v1663_v57 }
 0x634   : > { %1743 = vst [vmem:[%s3902_s15 + $0x8] sm:$0xff] %v1669_v56 }
 0x635   : > { %1742 = vst [vmem:[%s3902_s15] sm:$0xff] %v1664_v58 }
 0x639   : > { %v2643_v59 = vpop.f32.mrb[34].mxu1 }
 0x63a   : > { %v1679_v60 = vadd.f32 %v2643_v59, %v2177_v54  ;;  %v1673_v61 = vpop.f32.mrb[35].mxu1 }
 0x63b   : > { %v1674_v62 = vadd.f32 %v2177_v54, %v1673_v61 }
 0x63c   : > { %1745 = vst [vmem:[%s3902_s15 + $0x18] sm:$0xff] %v1679_v60 }
 0x63d   : > { %1744 = vst [vmem:[%s3902_s15 + $0x10] sm:$0xff] %v1674_v62 }
 0x641   : > { %v2646_v63 = vpop.f32.mrb[36].mxu1 }
 0x642   : > { %v1689_v0 = vadd.f32 %v2646_v63, %v2177_v54  ;;  %v1683_v1 = vpop.f32.mrb[37].mxu1 }
 0x643   : > { %v1684_v2 = vadd.f32 %v2177_v54, %v1683_v1 }
 0x644   : > { %1747 = vst [vmem:[%s3902_s15 + $0x28] sm:$0xff] %v1689_v0 }
 0x645   : > { %1746 = vst [vmem:[%s3902_s15 + $0x20] sm:$0xff] %v1684_v2 }
 0x649   : > { %v2649_v3 = vpop.f32.mrb[38].mxu1 }
 0x64a   : > { %v1699_v4 = vadd.f32 %v2649_v3, %v2177_v54  ;;  %v1693_v5 = vpop.f32.mrb[39].mxu1 }
 0x64b   : > { %v1694_v6 = vadd.f32 %v2177_v54, %v1693_v5 }
 0x64c   : > { %1749 = vst [vmem:[%s3902_s15 + $0x38] sm:$0xff] %v1699_v4 }
 0x64d   : > { %1748 = vst [vmem:[%s3902_s15 + $0x30] sm:$0xff] %v1694_v6 }
 0x651   : > { %v2652_v51 = vpop.f32.mrb[40].mxu1 }
 0x652   : > { %v1709_v7 = vadd.f32 %v2652_v51, %v2177_v54  ;;  %v1703_v8 = vpop.f32.mrb[41].mxu1 }
 0x653   : > { %v1704_v9 = vadd.f32 %v2177_v54, %v1703_v8 }
 0x654   : > { %1751 = vst [vmem:[%s3902_s15 + $0x48] sm:$0xff] %v1709_v7 }
 0x655   : > { %1750 = vst [vmem:[%s3902_s15 + $0x40] sm:$0xff] %v1704_v9 }
 0x659   : > { %v2655_v10 = vpop.f32.mrb[42].mxu1 }
 0x65a   : > { %v1719_v11 = vadd.f32 %v2655_v10, %v2177_v54  ;;  %v1713_v12 = vpop.f32.mrb[43].mxu1 }
 0x65b   : > { %v1714_v13 = vadd.f32 %v2177_v54, %v1713_v12 }
 0x65c   : > { %1753 = vst [vmem:[%s3902_s15 + $0x58] sm:$0xff] %v1719_v11 }
 0x65d   : > { %1752 = vst [vmem:[%s3902_s15 + $0x50] sm:$0xff] %v1714_v13 }
 0x661   : > { %v2658_v14 = vpop.f32.mrb[44].mxu1 }
 0x662   : > { %v1729_v15 = vadd.f32 %v2658_v14, %v2177_v54  ;;  %v1723_v16 = vpop.f32.mrb[45].mxu1 }
 0x663   : > { %v1724_v17 = vadd.f32 %v2177_v54, %v1723_v16 }
 0x664   : > { %1755 = vst [vmem:[%s3902_s15 + $0x68] sm:$0xff] %v1729_v15 }
 0x665   : > { %1754 = vst [vmem:[%s3902_s15 + $0x60] sm:$0xff] %v1724_v17 }
 0x669   : > { %v2661_v18 = vpop.f32.mrb[46].mxu1 }
 0x66a   : > { %v1739_v19 = vadd.f32 %v2661_v18, %v2177_v54  ;;  %v1733_v20 = vpop.f32.mrb[47].mxu1 }
 0x66b   : > { %v1734_v21 = vadd.f32 %v2177_v54, %v1733_v20 }
 0x66c   : > { %1757 = vst [vmem:[%s3902_s15 + $0x78] sm:$0xff] %v1739_v19 }
 0x66d   : > { %1756 = vst [vmem:[%s3902_s15 + $0x70] sm:$0xff] %v1734_v21  ;;  %v2696_v23 = vpop.f32.mrb[48].mxu1 }
 0x66e   : > { %v1853_v24 = vadd.f32 %v2696_v23, %v3932_v22  ;;  %v1847_v25 = vpop.f32.mrb[49].mxu1 }
 0x66f   : > { %3310 = shalt.err (!%p3307_p10)
}
 0x670   : > { %s3311_s15 = scalar_lea.hbm %s3925_s5, 2048  ;;  %s3315_s17 = scalar_lea.hbm %s4112_s22, 4096 }
 0x671   : > { %p3312_p11 = scmp.ne.s32.totalorder %s3925_s5, %s3311_s15  ;;  %p3316_p9 = scmp.lt.u32.totalorder %s3925_s5, %s4112_s22 }
 0x672   : > { %p3317_p7 = scmp.lt.u32.totalorder %s3315_s17, %s3311_s15  ;;  %p3319_p12 = scmp.lt.u32.totalorder %s3311_s15, %s3925_s5 }
 0x673   : > { %p3313_p3 = pnand %p3312_p11, %p4114_p1 }
 0x674   : > { %p3318_p4 = por %p3317_p7, %p3316_p9 }
 0x675   : > { %p3314_p5 = pneg %p3313_p3 }
 0x676   : > { %p3320_p13 = por %p3319_p12, %p3318_p4 }
 0x678   : > { %p3321_p0 = pnand %p3320_p13, %p3314_p5 }
 0x67a   : > { %3324 = shalt.err (!%p3321_p0)
}
 0x67b   : > { %s3427_s1 = smov 128   ;;  %s3428_s13 = smov 8   ;;  %v1848_v26 = vadd.f32 %v3932_v22, %v1847_v25  ;;  %v2699_v27 = vpop.f32.mrb[50].mxu1 }
 0x67c   : > { %2972 = dma.vmem_to_hbm [thread:$0]  (%p4114_p1), %s3927_s30, 2048, %s3925_s5, %s1943_s28, %s3427_s1, %s3427_s1, %s3428_s13   ;;  %v1863_v28 = vadd.f32 %v2699_v27, %v3932_v22  ;;  %v1857_v29 = vpop.f32.mrb[51].mxu1 }
 0x67d   : > { %s3966_s6 = scalar_lea.vmem [#allocation17], %s3801_s11  ;;  %v1858_v30 = vadd.f32 %v3932_v22, %v1857_v29  ;;  %v2702_v31 = vpop.f32.mrb[52].mxu1  ;;  %s4115_s28 = sld [smem:[#allocation34_spill]] }
 0x67e   : > { %1927 = vst [vmem:[%s3966_s6 + $0x8] sm:$0xff] %v1853_v24  ;;  %1926 = vst [vmem:[%s3966_s6] sm:$0xff] %v1848_v26  ;;  %v1873_v32 = vadd.f32 %v2702_v31, %v3932_v22  ;;  %v1867_v33 = vpop.f32.mrb[53].mxu1  ;;  %s1977_s11 = sshll.u32 %s3966_s6, 4  ;;  %s1948_s8 = scalar_lea.sflag [#allocation18], %s3798_s16  ;;  %s4004_s11 = int_to_ptr.vmem [resolvable:$true] %s1977_s11 }
 0x67f   : > { %1929 = vst [vmem:[%s3966_s6 + $0x18] sm:$0xff] %v1863_v28  ;;  %1928 = vst [vmem:[%s3966_s6 + $0x10] sm:$0xff] %v1858_v30  ;;  %v1868_v34 = vadd.f32 %v3932_v22, %v1867_v33  ;;  %v2705_v35 = vpop.f32.mrb[54].mxu1  ;;  %s3325_s17 = scalar_lea.vmem %s4004_s11, 2048  ;;  %s3429_s25 = smov [#allocation17]  }
 0x680   : > { %1931 = vst [vmem:[%s3966_s6 + $0x28] sm:$0xff] %v1873_v32  ;;  %v1883_v36 = vadd.f32 %v2705_v35, %v3932_v22  ;;  %v1877_v37 = vpop.f32.mrb[55].mxu1  ;;  %p3326_p2 = scmp.ne.s32.totalorder %s4004_s11, %s3325_s17  ;;  %s3329_s24 = sshll.u32 %s3429_s25, 4  ;;  %s3330_s24 = int_to_ptr.vmem [resolvable:$false] %s3329_s24 }
 0x681   : > { %1930 = vst [vmem:[%s3966_s6 + $0x20] sm:$0xff] %v1868_v34  ;;  %v1878_v38 = vadd.f32 %v3932_v22, %v1877_v37  ;;  %v2708_v39 = vpop.f32.mrb[56].mxu1  ;;  %s3331_s29 = scalar_lea.vmem %s3330_s24, 4096  ;;  %p3332_p10 = scmp.lt.s32.totalorder %s4004_s11, %s3330_s24 }
 0x682   : > { %1933 = vst [vmem:[%s3966_s6 + $0x38] sm:$0xff] %v1883_v36  ;;  %v1893_v40 = vadd.f32 %v2708_v39, %v3932_v22  ;;  %v1887_v41 = vpop.f32.mrb[57].mxu1  ;;  %p3327_p8 = pnand %p3326_p2, %p4114_p1  ;;  %p3333_p11 = scmp.lt.s32.totalorder %s3331_s29, %s3325_s17 }
 0x683   : > { %1932 = vst [vmem:[%s3966_s6 + $0x30] sm:$0xff] %v1878_v38  ;;  %v1888_v42 = vadd.f32 %v3932_v22, %v1887_v41  ;;  %v2711_v43 = vpop.f32.mrb[58].mxu1  ;;  %s4002_s15 = scalar_lea.hbm %s4115_s28, %s2188_s14 }
 0x684   : > { %1935 = vst [vmem:[%s3966_s6 + $0x48] sm:$0xff] %v1893_v40  ;;  %v1903_v44 = vadd.f32 %v2711_v43, %v3932_v22  ;;  %v1897_v45 = vpop.f32.mrb[59].mxu1  ;;  %p3328_p6 = pneg %p3327_p8  ;;  %p3334_p3 = por %p3333_p11, %p3332_p10 }
 0x685   : > { %1934 = vst [vmem:[%s3966_s6 + $0x40] sm:$0xff] %v1888_v42  ;;  %v1898_v46 = vadd.f32 %v3932_v22, %v1897_v45  ;;  %v2714_v47 = vpop.f32.mrb[60].mxu1 }
 0x686   : > { %1937 = vst [vmem:[%s3966_s6 + $0x58] sm:$0xff] %v1903_v44  ;;  %v1913_v48 = vadd.f32 %v2714_v47, %v3932_v22  ;;  %v1907_v49 = vpop.f32.mrb[61].mxu1  ;;  %p3335_p5 = pnand %p3334_p3, %p3328_p6 }
 0x687   : > { %1936 = vst [vmem:[%s3966_s6 + $0x50] sm:$0xff] %v1898_v46  ;;  %v1908_v50 = vadd.f32 %v3932_v22, %v1907_v49 }
 0x688   : > { %1939 = vst [vmem:[%s3966_s6 + $0x68] sm:$0xff] %v1913_v48 }
 0x689   : > { %1938 = vst [vmem:[%s3966_s6 + $0x60] sm:$0xff] %v1908_v50  ;;  %v2717_v52 = vpop.f32.mrb[62].mxu1 }
 0x68a   : > { %v1923_v53 = vadd.f32 %v2717_v52, %v3932_v22  ;;  %v1917_v54 = vpop.f32.mrb[63].mxu1 }
 0x68b   : > { %v1918_v55 = vadd.f32 %v3932_v22, %v1917_v54 }
 0x68c   : > { %1941 = vst [vmem:[%s3966_s6 + $0x78] sm:$0xff] %v1923_v53 }
 0x68d   : > { %1940 = vst [vmem:[%s3966_s6 + $0x70] sm:$0xff] %v1918_v55 }
 0x68e   : > { %3338 = shalt.err (!%p3335_p5)
}
 0x68f   : > { %s3339_s14 = scalar_lea.hbm %s4002_s15, 2048  ;;  %s3343_s5 = scalar_lea.hbm %s4115_s28, 4096 }
 0x690   : > { %p3340_p9 = scmp.ne.s32.totalorder %s4002_s15, %s3339_s14  ;;  %p3344_p12 = scmp.lt.u32.totalorder %s4002_s15, %s4115_s28 }
 0x691   : > { %p3345_p13 = scmp.lt.u32.totalorder %s3343_s5, %s3339_s14  ;;  %p3347_p2 = scmp.lt.u32.totalorder %s3339_s14, %s4002_s15 }
 0x692   : > { %p3341_p7 = pnand %p3340_p9, %p4114_p1 }
 0x693   : > { %p3346_p0 = por %p3345_p13, %p3344_p12 }
 0x694   : > { %p3342_p4 = pneg %p3341_p7 }
 0x695   : > { %p3348_p8 = por %p3347_p2, %p3346_p0 }
 0x697   : > { %p3349_p6 = pnand %p3348_p8, %p3342_p4 }
 0x699   : > { %3352 = shalt.err (!%p3349_p6)
}
 0x69a   : > { %2973 = dma.vmem_to_hbm [thread:$0]  (%p4114_p1), %s4004_s11, 2048, %s4002_s15, %s1948_s8, %s3427_s1, %s3427_s1, %s3428_s13  }
 0x69b PF: > { %s1992_s17 = sand.u32 1, %s3399_s18   ;;  %p4116_p10 = scmp.ne.s32.totalorder %s4097_s4, 0 }
 0x69c   : > { %p4117_p11 = scmp.ge.s32.totalorder %s3411_s21, 2  ;;  %s1993_s29 = scalar_lea.sflag [#allocation4], %s1992_s17 }
 0x69e   : > { %p3003_p3 = pnand %p4117_p11, %p4116_p10 }
 0x6a0   : > { %3390 = dma.done.wait (!%p3003_p3), %s1993_s29, 2048  }
 0x6a1   : > { %3392 = vsyncadd (!%p3003_p3), %s1993_s29, 4294965248  ;;  %s2002_s23 = scalar_lea.sflag [#allocation18], %s1992_s17 }
 0x6a2   : > { %3394 = dma.done.wait (!%p3003_p3), %s2002_s23, 2048  }
 0x6a3   : > { %3396 = vsyncadd (!%p3003_p3), %s2002_s23, 4294965248  ;;  %p36_p1 = scmp.ge.s32.totalorder %s3722_s26, 4   ;;  %s4118_s18 = smov %s3403_s19 }
 0x6a4   : > { %s4119_s19 = smov %s3407_s20  ;;  %s4120_s20 = smov %s3734_s27 }
 0x6a5   : > { %s4121_s21 = smov %s3722_s26  ;;  %38 = sbr.rel (!%p36_p1) target bundleno = 21 (0x15), region = 166 }
 0x6ac   :  { %2007 = vsyncpa [#allocation3], 1 }
 0x6ad   :  { %2009 = vsyncpa [#allocation3 + $0x1], 1 }
 0x6ae   :  { %2010 = vsyncpa [#allocation6], 1 }
 0x6af   :  { %2011 = vsyncpa [#allocation9], 1 }
 0x6b0   :  { %2012 = vsyncpa [#allocation12], 1 }
 0x6b1   :  { %2013 = vsyncpa [#allocation15], 1 }
 0x6b2   :  { %2014 = vsyncpa [#allocation4], 1 }
 0x6b3   :  { %2016 = vsyncpa [#allocation4 + $0x1], 1 }
 0x6b4   :  { %2017 = vsyncpa [#allocation18], 1 }
 0x6b5   :  { %2019 = vsyncpa [#allocation18 + $0x1], 1 }

</bundles_post_ra>
